<compile_context>
chip_gen: v6e
topology: v6e:2x2x1
jax: 0.10.0
libtpu: 0.0.40
codegen_flags: <defaults>
</compile_context>

<pallas_src>
import functools

import jax
import jax.numpy as jnp
from jax import lax
from jax.experimental import pallas as pl
from jax.experimental.pallas import tpu as pltpu


# ---------------------------------------------------------------------------
# Pass 1: fused (upsample x2 + 3x3 conv) via sub-pixel phases, + BN partials.
# ---------------------------------------------------------------------------
def _conv_subpixel_kernel(x_ref, w_ref, y_ref, stats_ref):
    # x_ref    : (1, TH0+2, W0+2, Cin)   zero-padded ORIGINAL-resolution row tile
    # w_ref    : (9*Cin, 4*Cout)         phase-folded weights
    # y_ref    : (1, TH0*W0, 4*Cout)     conv output (phase-packed channels)
    # stats_ref: (1, 2, 4*Cout)          per-block [sum, sum_sq]
    _, hp, wp, cin = x_ref.shape
    th0, w0 = hp - 2, wp - 2
    x = x_ref[0]                                          # (TH0+2, W0+2, Cin)

    # im2col over the 3x3 window of the padded original -> single MXU matmul.
    taps = [x[ky:ky + th0, kx:kx + w0, :]                 # (TH0, W0, Cin) each
            for ky in range(3) for kx in range(3)]
    col = jnp.concatenate(taps, axis=2).reshape(th0 * w0, 9 * cin)
    acc = jnp.dot(col, w_ref[...], preferred_element_type=jnp.float32)

    y_ref[0] = acc
    # BN partial stats (per phase-packed channel; phases folded in the wrapper).
    s1 = jnp.sum(acc, axis=0, keepdims=True)
    s2 = jnp.sum(acc * acc, axis=0, keepdims=True)
    stats_ref[0] = jnp.concatenate([s1, s2], axis=0)


# ---------------------------------------------------------------------------
# Pass 2: lane-dense fused BatchNorm scale/shift + ReLU (in place).
# ---------------------------------------------------------------------------
def _bn_relu_kernel(y_ref, scale_ref, shift_ref, o_ref):
    # y_ref/o_ref: (TB, R, LANE_W) aliased;  scale/shift: (1, 1, LANE_W)
    o_ref[...] = jnp.maximum(y_ref[...] * scale_ref[...] + shift_ref[...], 0.0)


def _pick_row_tile(h0, w0, cin, cout, budget_bytes=6 * 1024 * 1024):
    """Largest row tile (dividing H0) whose working set fits a VMEM budget."""
    for th0 in (256, 128, 64, 32, 16, 8, 4, 2, 1):
        if h0 % th0:
            continue
        p = th0 * w0
        need = 4 * ((th0 + 2) * (w0 + 2) * cin      # input tile
                    + p * 9 * cin                   # im2col buffer
                    + 2 * p * 4 * cout)             # acc + output tile
        if need <= budget_bytes:
            return th0
    return 1


def _pick_slab_tile(num_slabs, slab_bytes, budget_bytes=4 * 1024 * 1024):
    """Largest divisor of num_slabs whose block fits a VMEM budget (pass 2)."""
    tb = 1
    for cand in range(1, num_slabs + 1):
        if num_slabs % cand == 0 and cand * slab_bytes <= budget_bytes:
            tb = cand
    return tb


@functools.partial(jax.jit, static_argnames=("row_tile",))
def upsample_conv(x_nchw, weight, bias, gamma, beta, row_tile=None):
    """UpSampleConv forward.  x_nchw: (N, Cin, H0, W0) f32.  Returns NCHW f32.

    `bias` is accepted for interface parity but is mathematically redundant: a
    conv bias added before training-mode BatchNorm cancels exactly in (x-mean).
    """
    del bias
    n, cin, h0, w0 = x_nchw.shape
    cout = weight.shape[0]
    th0 = row_tile if row_tile is not None else _pick_row_tile(h0, w0, cin, cout)
    assert h0 % th0 == 0, (h0, th0)
    n_tiles = h0 // th0
    p = th0 * w0            # pixels per tile (original resolution)
    cp = 4 * cout           # phase-packed channel width

    # ---- wrapper layout prep (original resolution only; no 2x tensor ever) ----
    x_nhwc = jnp.transpose(x_nchw, (0, 2, 3, 1))
    xpad = jnp.pad(x_nhwc, ((0, 0), (1, 1), (1, 1), (0, 0)))
    # halo'd row tiles (2-row overlap) via one gather -> non-overlapping blocks.
    row_idx = (jnp.arange(n_tiles)[:, None] * th0
               + jnp.arange(th0 + 2)[None, :]).reshape(-1)
    x_tiles = xpad[:, row_idx].reshape(n * n_tiles, th0 + 2, w0 + 2, cin)

    # Sub-pixel weight folding: M[phase, a, k] selects which padded-original
    # row/col offset `a` the upsampled 3x3 tap k reads for output parity `phase`.
    m = jnp.array([[[1., 0., 0.], [0., 1., 1.], [0., 0., 0.]],
                   [[0., 0., 0.], [1., 1., 0.], [0., 0., 1.]]], dtype=jnp.float32)
    w_big = jnp.einsum("pak,qbl,oikl->abipqo", m, m,
                       weight.astype(jnp.float32)).reshape(9 * cin, cp)

    grid1 = (n, n_tiles)
    cparams1 = pltpu.CompilerParams(
        dimension_semantics=("parallel", "parallel"),
        vmem_limit_bytes=32 * 1024 * 1024)

    y, stats = pl.pallas_call(
        _conv_subpixel_kernel,
        grid=grid1,
        in_specs=[
            pl.BlockSpec((1, th0 + 2, w0 + 2, cin),
                         lambda i, t: (i * n_tiles + t, 0, 0, 0)),
            pl.BlockSpec((9 * cin, cp), lambda i, t: (0, 0)),
        ],
        out_specs=[
            pl.BlockSpec((1, p, cp), lambda i, t: (i * n_tiles + t, 0, 0)),
            pl.BlockSpec((1, 2, cp), lambda i, t: (i * n_tiles + t, 0, 0)),
        ],
        out_shape=[
            jax.ShapeDtypeStruct((n * n_tiles, p, cp), jnp.float32),
            jax.ShapeDtypeStruct((n * n_tiles, 2, cp), jnp.float32),
        ],
        compiler_params=cparams1,
    )(x_tiles, w_big)

    # ---- tiny global BN reduction (O(Cout) glue; keeps the grid fully parallel) ----
    count = n * 4 * h0 * w0                                   # N * 2H0 * 2W0
    tot = jnp.sum(stats, axis=0).reshape(2, 4, cout).sum(axis=1)   # fold phases
    mean = tot[0] / count
    var = tot[1] / count - mean * mean                        # biased variance
    scale = gamma * lax.rsqrt(var + 1e-5)                     # gamma / sqrt(var+eps)
    shift = beta - mean * scale                               # one fused FMA in pass 2

    # ---- pass 2: lane-dense in-place normalize + ReLU ----
    if cp < 128 and 128 % cp == 0 and p % (128 // cp) == 0:
        grp = 128 // cp            # pixels packed per 128-lane row
    else:
        grp = 1
    lane_w = grp * cp
    rows = p // grp
    y2 = y.reshape(n * n_tiles, rows, lane_w)                 # free, contiguous
    scale_l = jnp.tile(scale, 4 * grp).reshape(1, 1, lane_w)
    shift_l = jnp.tile(shift, 4 * grp).reshape(1, 1, lane_w)

    # Batch several (rows, lane_w) slabs per grid step to amortize per-step cost.
    tb = _pick_slab_tile(n * n_tiles, rows * lane_w * 4)
    grid2 = (n * n_tiles // tb,)
    cparams2 = pltpu.CompilerParams(
        dimension_semantics=("parallel",),
        vmem_limit_bytes=32 * 1024 * 1024)

    out = pl.pallas_call(
        _bn_relu_kernel,
        grid=grid2,
        in_specs=[
            pl.BlockSpec((tb, rows, lane_w), lambda b: (b, 0, 0)),
            pl.BlockSpec((1, 1, lane_w), lambda b: (0, 0, 0)),
            pl.BlockSpec((1, 1, lane_w), lambda b: (0, 0, 0)),
        ],
        out_specs=pl.BlockSpec((tb, rows, lane_w), lambda b: (b, 0, 0)),
        out_shape=jax.ShapeDtypeStruct((n * n_tiles, rows, lane_w), jnp.float32),
        input_output_aliases={0: 0},
        compiler_params=cparams2,
    )(y2, scale_l, shift_l)

    # Phase-planar -> NCHW: the phase interleave rides the one transpose we need
    # anyway for the NCHW interface (single XLA pass over the output).
    out = out.reshape(n, n_tiles, th0, w0, 2, 2, cout)        # (n,t,Y,X,py,px,co)
    out = jnp.transpose(out, (0, 6, 1, 2, 4, 3, 5)).reshape(n, cout, 2 * h0, 2 * w0)
    return out


def upsample_conv_reference(x_nchw, weight, bias, gamma, beta):
    """Pure-JAX reference matching the PyTorch module (training-mode BN)."""
    x_up = jnp.repeat(jnp.repeat(x_nchw, 2, axis=2), 2, axis=3)
    y = lax.conv_general_dilated(x_up, weight, window_strides=(1, 1),
                                 padding=((1, 1), (1, 1)),
                                 dimension_numbers=("NCHW", "OIHW", "NCHW"))
    y = y + bias[None, :, None, None]
    mean = jnp.mean(y, axis=(0, 2, 3), keepdims=True)
    var = jnp.mean((y - mean) ** 2, axis=(0, 2, 3), keepdims=True)
    y = (y - mean) * lax.rsqrt(var + 1e-5)
    y = y * gamma[None, :, None, None] + beta[None, :, None, None]
    return jnp.maximum(y, 0.0)


if __name__ == "__main__":
    key = jax.random.PRNGKey(0)
    k_x, k_w, k_b, k_g, k_bt = jax.random.split(key, 5)

    N, Cin, Cout, H0, W0 = 2, 4, 8, 16, 16
    x = jax.random.normal(k_x, (N, Cin, H0, W0), dtype=jnp.float32)
    # Deterministic synthetic parameters (nn.Conv2d(Cin, Cout, 3, pad=1), nn.BatchNorm2d).
    weight = 0.1 * jax.random.normal(k_w, (Cout, Cin, 3, 3), dtype=jnp.float32)
    bias = 0.1 * jax.random.normal(k_b, (Cout,), dtype=jnp.float32)
    gamma = 1.0 + 0.1 * jax.random.normal(k_g, (Cout,), dtype=jnp.float32)
    beta = 0.1 * jax.random.normal(k_bt, (Cout,), dtype=jnp.float32)

    # row_tile=8 -> grid (N=2, row_tiles=2): exercises batch + row tiling and
    # the cross-tile BN stat reduction.
    out = jax.block_until_ready(
        upsample_conv(x, weight, bias, gamma, beta, row_tile=8))
    ref = jax.block_until_ready(
        upsample_conv_reference(x, weight, bias, gamma, beta))

    assert out.shape == (N, Cout, 2 * H0, 2 * W0), out.shape
    max_err = float(jnp.max(jnp.abs(out - ref)))
    assert jnp.allclose(out, ref, atol=1e-4, rtol=1e-4), max_err
    print("KERNEL_OK")
</pallas_src>

<mosaic_0001>
module attributes {stable_mosaic.version = 11 : i64} {
  func.func @_conv_subpixel_kernel(%arg0: i32, %arg1: i32, %arg2: memref<1x10x18x4xf32, #tpu.memory_space<vmem>>, %arg3: memref<36x32xf32, #tpu.memory_space<vmem>>, %arg4: memref<1x128x32xf32, #tpu.memory_space<vmem>>, %arg5: memref<1x2x32xf32, #tpu.memory_space<vmem>>) attributes {dimension_semantics = [#tpu.dimension_semantics<parallel>, #tpu.dimension_semantics<parallel>], iteration_bounds = array<i64: 2, 2>, scalar_prefetch = 0 : i64, scratch_operands = 0 : i64, tpu.core_type = #tpu.core_type<tc>, window_params = [{transform_indices = @transform_0, window_bounds = array<i64: 1, 10, 18, 4>}, {pipeline_mode = #tpu.pipeline_mode<synchronous>, transform_indices = @transform_1, window_bounds = array<i64: 36, 32>}, {transform_indices = @transform_2, window_bounds = array<i64: 1, 128, 32>}, {transform_indices = @transform_3, window_bounds = array<i64: 1, 2, 32>}]} {
    %c0 = arith.constant 0 : index
    %c0_0 = arith.constant 0 : index
    %c0_1 = arith.constant 0 : index
    %c0_2 = arith.constant 0 : index
    %0 = vector.load %arg2[%c0, %c0_0, %c0_1, %c0_2] : memref<1x10x18x4xf32, #tpu.memory_space<vmem>>, vector<1x10x18x4xf32>
    %1 = vector.shape_cast %0 : vector<1x10x18x4xf32> to vector<10x18x4xf32>
    %2 = vector.extract_strided_slice %1 {offsets = [0, 0, 0], sizes = [8, 16, 4], strides = [1, 1, 1]} : vector<10x18x4xf32> to vector<8x16x4xf32>
    %3 = vector.extract_strided_slice %1 {offsets = [0, 1, 0], sizes = [8, 16, 4], strides = [1, 1, 1]} : vector<10x18x4xf32> to vector<8x16x4xf32>
    %4 = vector.extract_strided_slice %1 {offsets = [0, 2, 0], sizes = [8, 16, 4], strides = [1, 1, 1]} : vector<10x18x4xf32> to vector<8x16x4xf32>
    %5 = vector.extract_strided_slice %1 {offsets = [1, 0, 0], sizes = [8, 16, 4], strides = [1, 1, 1]} : vector<10x18x4xf32> to vector<8x16x4xf32>
    %6 = vector.extract_strided_slice %1 {offsets = [1, 1, 0], sizes = [8, 16, 4], strides = [1, 1, 1]} : vector<10x18x4xf32> to vector<8x16x4xf32>
    %7 = vector.extract_strided_slice %1 {offsets = [1, 2, 0], sizes = [8, 16, 4], strides = [1, 1, 1]} : vector<10x18x4xf32> to vector<8x16x4xf32>
    %8 = vector.extract_strided_slice %1 {offsets = [2, 0, 0], sizes = [8, 16, 4], strides = [1, 1, 1]} : vector<10x18x4xf32> to vector<8x16x4xf32>
    %9 = vector.extract_strided_slice %1 {offsets = [2, 1, 0], sizes = [8, 16, 4], strides = [1, 1, 1]} : vector<10x18x4xf32> to vector<8x16x4xf32>
    %10 = vector.extract_strided_slice %1 {offsets = [2, 2, 0], sizes = [8, 16, 4], strides = [1, 1, 1]} : vector<10x18x4xf32> to vector<8x16x4xf32>
    %11 = tpu.concatenate %2, %3, %4, %5, %6, %7, %8, %9, %10 in 2 : vector<8x16x4xf32>, vector<8x16x4xf32>, vector<8x16x4xf32>, vector<8x16x4xf32>, vector<8x16x4xf32>, vector<8x16x4xf32>, vector<8x16x4xf32>, vector<8x16x4xf32>, vector<8x16x4xf32> -> vector<8x16x36xf32>
    %12 = vector.shape_cast %11 : vector<8x16x36xf32> to vector<128x36xf32>
    %c0_3 = arith.constant 0 : index
    %c0_4 = arith.constant 0 : index
    %13 = vector.load %arg3[%c0_3, %c0_4] : memref<36x32xf32, #tpu.memory_space<vmem>>, vector<36x32xf32>
    %cst = arith.constant dense<0.000000e+00> : vector<128x32xf32>
    %14 = tpu.matmul %12, %13, %cst {dimension_numbers = #tpu.dot_dimension_numbers<[1], [0], [0], [1], [0, 0, 1, 1], [], []>} : vector<128x36xf32>, vector<36x32xf32>, vector<128x32xf32> -> vector<128x32xf32>
    %c0_5 = arith.constant 0 : index
    %c0_6 = arith.constant 0 : index
    %c0_7 = arith.constant 0 : index
    %15 = vector.load %arg4[%c0_5, %c0_6, %c0_7] : memref<1x128x32xf32, #tpu.memory_space<vmem>>, vector<1x128x32xf32>
    %16 = vector.shape_cast %15 : vector<1x128x32xf32> to vector<128x32xf32>
    %17 = vector.shape_cast %14 : vector<128x32xf32> to vector<1x128x32xf32>
    tpu.vector_store %arg4[%c0_5, %c0_6, %c0_7], %17 {strides = array<i32>} : memref<1x128x32xf32, #tpu.memory_space<vmem>>, vector<1x128x32xf32>,
    %cst_8 = arith.constant dense<0.000000e+00> : vector<32xf32>
    %18 = vector.multi_reduction <add>, %14, %cst_8 [0] : vector<128x32xf32> to vector<32xf32>
    %19 = vector.shape_cast %18 : vector<32xf32> to vector<1x32xf32>
    %20 = arith.mulf %14, %14 : vector<128x32xf32>
    %cst_9 = arith.constant dense<0.000000e+00> : vector<32xf32>
    %21 = vector.multi_reduction <add>, %20, %cst_9 [0] : vector<128x32xf32> to vector<32xf32>
    %22 = vector.shape_cast %21 : vector<32xf32> to vector<1x32xf32>
    %23 = tpu.concatenate %19, %22 in 0 : vector<1x32xf32>, vector<1x32xf32> -> vector<2x32xf32>
    %c0_10 = arith.constant 0 : index
    %c0_11 = arith.constant 0 : index
    %c0_12 = arith.constant 0 : index
    %24 = vector.load %arg5[%c0_10, %c0_11, %c0_12] : memref<1x2x32xf32, #tpu.memory_space<vmem>>, vector<1x2x32xf32>
    %25 = vector.shape_cast %24 : vector<1x2x32xf32> to vector<2x32xf32>
    %26 = vector.shape_cast %23 : vector<2x32xf32> to vector<1x2x32xf32>
    tpu.vector_store %arg5[%c0_10, %c0_11, %c0_12], %26 {strides = array<i32>} : memref<1x2x32xf32, #tpu.memory_space<vmem>>, vector<1x2x32xf32>,
    return
  }
  func.func @transform_0(%arg0: i32, %arg1: i32) -> (i32, i32, i32, i32) {
    %c2_i32 = arith.constant 2 : i32
    %0 = arith.muli %arg0, %c2_i32 : i32
    %1 = arith.addi %0, %arg1 : i32
    %c0_i32 = arith.constant 0 : i32
    %c0_i32_0 = arith.constant 0 : i32
    %c0_i32_1 = arith.constant 0 : i32
    %c0_i32_2 = arith.constant 0 : i32
    return %1, %c0_i32, %c0_i32_0, %c0_i32_1 : i32, i32, i32, i32
  }
  func.func @transform_1(%arg0: i32, %arg1: i32) -> (i32, i32) {
    %c0_i32 = arith.constant 0 : i32
    %c0_i32_0 = arith.constant 0 : i32
    %c0_i32_1 = arith.constant 0 : i32
    return %c0_i32, %c0_i32_0 : i32, i32
  }
  func.func @transform_2(%arg0: i32, %arg1: i32) -> (i32, i32, i32) {
    %c2_i32 = arith.constant 2 : i32
    %0 = arith.muli %arg0, %c2_i32 : i32
    %1 = arith.addi %0, %arg1 : i32
    %c0_i32 = arith.constant 0 : i32
    %c0_i32_0 = arith.constant 0 : i32
    %c0_i32_1 = arith.constant 0 : i32
    return %1, %c0_i32, %c0_i32_0 : i32, i32, i32
  }
  func.func @transform_3(%arg0: i32, %arg1: i32) -> (i32, i32, i32) {
    %c2_i32 = arith.constant 2 : i32
    %0 = arith.muli %arg0, %c2_i32 : i32
    %1 = arith.addi %0, %arg1 : i32
    %c0_i32 = arith.constant 0 : i32
    %c0_i32_0 = arith.constant 0 : i32
    %c0_i32_1 = arith.constant 0 : i32
    return %1, %c0_i32, %c0_i32_0 : i32, i32, i32
  }
}

module attributes {stable_mosaic.version = 11 : i64} {
  func.func @_bn_relu_kernel(%arg0: i32, %arg1: memref<4x32x128xf32, #tpu.memory_space<vmem>>, %arg2: memref<1x1x128xf32, #tpu.memory_space<vmem>>, %arg3: memref<1x1x128xf32, #tpu.memory_space<vmem>>, %arg4: memref<4x32x128xf32, #tpu.memory_space<vmem>>) attributes {dimension_semantics = [#tpu.dimension_semantics<parallel>], iteration_bounds = array<i64: 1>, scalar_prefetch = 0 : i64, scratch_operands = 0 : i64, tpu.core_type = #tpu.core_type<tc>, window_params = [{transform_indices = @transform_0, window_bounds = array<i64: 4, 32, 128>}, {pipeline_mode = #tpu.pipeline_mode<synchronous>, transform_indices = @transform_1, window_bounds = array<i64: 1, 1, 128>}, {pipeline_mode = #tpu.pipeline_mode<synchronous>, transform_indices = @transform_2, window_bounds = array<i64: 1, 1, 128>}, {transform_indices = @transform_3, window_bounds = array<i64: 4, 32, 128>}]} {
    %c0 = arith.constant 0 : index
    %c0_0 = arith.constant 0 : index
    %c0_1 = arith.constant 0 : index
    %0 = vector.load %arg1[%c0, %c0_0, %c0_1] : memref<4x32x128xf32, #tpu.memory_space<vmem>>, vector<4x32x128xf32>
    %c0_2 = arith.constant 0 : index
    %c0_3 = arith.constant 0 : index
    %c0_4 = arith.constant 0 : index
    %1 = vector.load %arg2[%c0_2, %c0_3, %c0_4] : memref<1x1x128xf32, #tpu.memory_space<vmem>>, vector<1x1x128xf32>
    %2 = vector.broadcast %1 : vector<1x1x128xf32> to vector<4x32x128xf32>
    %3 = arith.mulf %0, %2 : vector<4x32x128xf32>
    %c0_5 = arith.constant 0 : index
    %c0_6 = arith.constant 0 : index
    %c0_7 = arith.constant 0 : index
    %4 = vector.load %arg3[%c0_5, %c0_6, %c0_7] : memref<1x1x128xf32, #tpu.memory_space<vmem>>, vector<1x1x128xf32>
    %5 = vector.broadcast %4 : vector<1x1x128xf32> to vector<4x32x128xf32>
    %6 = arith.addf %3, %5 : vector<4x32x128xf32>
    %cst = arith.constant 0.000000e+00 : f32
    %7 = vector.broadcast %cst : f32 to vector<4x32x128xf32>
    %8 = arith.maximumf %6, %7 : vector<4x32x128xf32>
    %c0_8 = arith.constant 0 : index
    %c0_9 = arith.constant 0 : index
    %c0_10 = arith.constant 0 : index
    %9 = vector.load %arg4[%c0_8, %c0_9, %c0_10] : memref<4x32x128xf32, #tpu.memory_space<vmem>>, vector<4x32x128xf32>
    tpu.vector_store %arg4[%c0_8, %c0_9, %c0_10], %8 {strides = array<i32>} : memref<4x32x128xf32, #tpu.memory_space<vmem>>, vector<4x32x128xf32>,
    return
  }
  func.func @transform_0(%arg0: i32) -> (i32, i32, i32) {
    %c0_i32 = arith.constant 0 : i32
    %c0_i32_0 = arith.constant 0 : i32
    %c0_i32_1 = arith.constant 0 : i32
    return %arg0, %c0_i32, %c0_i32_0 : i32, i32, i32
  }
  func.func @transform_1(%arg0: i32) -> (i32, i32, i32) {
    %c0_i32 = arith.constant 0 : i32
    %c0_i32_0 = arith.constant 0 : i32
    %c0_i32_1 = arith.constant 0 : i32
    %c0_i32_2 = arith.constant 0 : i32
    return %c0_i32, %c0_i32_0, %c0_i32_1 : i32, i32, i32
  }
  func.func @transform_2(%arg0: i32) -> (i32, i32, i32) {
    %c0_i32 = arith.constant 0 : i32
    %c0_i32_0 = arith.constant 0 : i32
    %c0_i32_1 = arith.constant 0 : i32
    %c0_i32_2 = arith.constant 0 : i32
    return %c0_i32, %c0_i32_0, %c0_i32_1 : i32, i32, i32
  }
  func.func @transform_3(%arg0: i32) -> (i32, i32, i32) {
    %c0_i32 = arith.constant 0 : i32
    %c0_i32_0 = arith.constant 0 : i32
    %c0_i32_1 = arith.constant 0 : i32
    return %arg0, %c0_i32, %c0_i32_0 : i32, i32, i32
  }
}

</mosaic_0001>

<bundles_post_ra>
// kernel: tile.18
= control target key start
LH: loop header
LB: loop body
LE: loop exit
PB: predicated region body
PF: predicated region fallthrough
CT: control target
= control target key end

     0   :  { %s28_s0 = inlined_call_operand.vmem [shape: f32[8], index: 0, kind: input, shape index: {}]   ;;  %s29_s1 = inlined_call_operand.vmem [shape: f32[16,8], index: 1, kind: output, shape index: {}]  }
   0x1   :  { %v4_v0 = vld [vmem:[%s28_s0] ss:$0 sm:$0xff] }
   0x2   :  { %5 = vst [vmem:[%s29_s1] sm:$0xff] %v4_v0  ;;  %8 = vst [vmem:[%s29_s1 + $0x8] sm:$0xff] %v4_v0 }

// kernel: tile.19
= control target key start
LH: loop header
LB: loop body
LE: loop exit
PB: predicated region body
PF: predicated region fallthrough
CT: control target
= control target key end

     0   :  { %s133_s10 = smov 120   ;;  %s134_s11 = smov 104   ;;  %vm3_vm0 = vcmask 64512   ;;  %vm9_vm1 = vcmask 1048512   ;;  %vm15_vm2 = vcmask 982912   ;;  %vm21_vm3 = vcmask 917312   ;;  %s209_s0 = inlined_call_operand.vmem [shape: f32[16,8], index: 0, kind: input, shape index: {}]   ;;  %s210_s1 = inlined_call_operand.vmem [shape: f32[1,1,128], index: 1, kind: output, shape index: {}]  }
   0x1   :  { %v103_v0 = vld [vmem:[%s209_s0 + $0xf] sm:$0x1]   ;;  %v105_v1 = vld [vmem:[%s209_s0 + $0xd] sm:$0x1]   ;;  %v104_v2 = vld [vmem:[%s209_s0 + $0xe] sm:$0x1]  }
   0x2   :  { %7 = vrot.lane.b32.xlu0 %v103_v0, %s133_s10  ;;  %19 = vrot.lane.b32.xlu1 %v105_v1, %s134_s11  ;;  %v106_v3 = vld [vmem:[%s209_s0 + $0xc] sm:$0x1]   ;;  %s135_s16 = smov 112   ;;  %s136_s17 = smov 96   ;;  %v107_v4 = vld [vmem:[%s209_s0 + $0xb] sm:$0x1]  }
   0x3   :  { %v108_v5 = vld [vmem:[%s209_s0 + $0xa] sm:$0x1]   ;;  %v2_v6 = vld [vmem:[%s209_s0] sm:$0x1]   ;;  %s137_s24 = smov 88   ;;  %s138_s25 = smov 80  }
   0x4   :  { %4 = vst.msk [vmem:[#allocation0] sm:$0x1] %vm3_vm0, %v2_v6   ;;  %v109_v7 = vld [vmem:[%s209_s0 + $0x9] sm:$0x1]   ;;  %v110_v8 = vld [vmem:[%s209_s0 + $0x8] sm:$0x1]  }
   0x5   :  { %s139_s30 = smov 72   ;;  %s140_s2 = smov 64   ;;  %v111_v9 = vld [vmem:[%s209_s0 + $0x7] sm:$0x1]   ;;  %v112_v10 = vld [vmem:[%s209_s0 + $0x6] sm:$0x1]  }
   0x6   :  { %13 = vrot.lane.b32.xlu0 %v104_v2, %s135_s16  ;;  %25 = vrot.lane.b32.xlu1 %v106_v3, %s136_s17  ;;  %s141_s7 = smov 56   ;;  %s142_s8 = smov 48   ;;  %v113_v11 = vld [vmem:[%s209_s0 + $0x5] sm:$0x1]   ;;  %v114_v12 = vld [vmem:[%s209_s0 + $0x4] sm:$0x1]  }
   0x7   :  { %s143_s13 = smov 40   ;;  %s144_s14 = smov 32   ;;  %v115_v13 = vld [vmem:[%s209_s0 + $0x3] sm:$0x1]   ;;  %v116_v14 = vld [vmem:[%s209_s0 + $0x2] sm:$0x1]  }
   0x8   :  { %s145_s19 = smov 24   ;;  %s146_s20 = smov 16   ;;  %v117_v15 = vld [vmem:[%s209_s0 + $0x1] sm:$0x1]   ;;  %vm27_vm4 = vcmask 851712   ;;  %vm33_vm5 = vcmask 786112  }
   0x9   :  { %s147_s0 = smov 8   ;;  %vm39_vm6 = vcmask 720512   ;;  %vm45_vm7 = vcmask 654912   ;;  %vm51_vm8 = vcmask 589312   ;;  %vm57_vm9 = vcmask 523712  }
   0xa   :  { %31 = vrot.lane.b32.xlu0 %v107_v4, %s137_s24  ;;  %37 = vrot.lane.b32.xlu1 %v108_v5, %s138_s25  ;;  %vm63_vm10 = vcmask 458112   ;;  %vm69_vm11 = vcmask 392512   ;;  %vm75_vm12 = vcmask 326912   ;;  %vm81_vm13 = vcmask 261312  }
   0xb   :  { %vm87_vm14 = vcmask 195712   ;;  %vm93_vm15 = vcmask 130112  }
   0xe   :  { %43 = vrot.lane.b32.xlu0 %v109_v7, %s139_s30  ;;  %49 = vrot.lane.b32.xlu1 %v110_v8, %s140_s2 }
  0x12   :  { %55 = vrot.lane.b32.xlu0 %v111_v9, %s141_s7  ;;  %61 = vrot.lane.b32.xlu1 %v112_v10, %s142_s8 }
  0x16   :  { %67 = vrot.lane.b32.xlu0 %v113_v11, %s143_s13  ;;  %73 = vrot.lane.b32.xlu1 %v114_v12, %s144_s14 }
  0x1a   :  { %79 = vrot.lane.b32.xlu0 %v115_v13, %s145_s19  ;;  %85 = vrot.lane.b32.xlu1 %v116_v14, %s146_s20 }
  0x1e   :  { %91 = vrot.lane.b32.xlu0 %v117_v15, %s147_s0 }
  0x74   :  { %v8_v16 = vpop.permute.xlu0 %7   ;;  %v20_v17 = vpop.permute.xlu1 %19  }
  0x75   :  { %10 = vst.msk [vmem:[#allocation0] sm:$0x1] %vm9_vm1, %v8_v16  }
  0x78   :  { %v14_v18 = vpop.permute.xlu0 %13   ;;  %v26_v19 = vpop.permute.xlu1 %25  }
  0x79   :  { %16 = vst.msk [vmem:[#allocation0] sm:$0x1] %vm15_vm2, %v14_v18  }
  0x7a   :  { %22 = vst.msk [vmem:[#allocation0] sm:$0x1] %vm21_vm3, %v20_v17  }
  0x7b   :  { %28 = vst.msk [vmem:[#allocation0] sm:$0x1] %vm27_vm4, %v26_v19  }
  0x7c   :  { %v32_v20 = vpop.permute.xlu0 %31   ;;  %v38_v21 = vpop.permute.xlu1 %37  }
  0x7d   :  { %34 = vst.msk [vmem:[#allocation0] sm:$0x1] %vm33_vm5, %v32_v20  }
  0x7e   :  { %40 = vst.msk [vmem:[#allocation0] sm:$0x1] %vm39_vm6, %v38_v21  }
  0x80   :  { %v44_v22 = vpop.permute.xlu0 %43   ;;  %v50_v23 = vpop.permute.xlu1 %49  }
  0x81   :  { %46 = vst.msk [vmem:[#allocation0] sm:$0x1] %vm45_vm7, %v44_v22  }
  0x82   :  { %52 = vst.msk [vmem:[#allocation0] sm:$0x1] %vm51_vm8, %v50_v23  }
  0x84   :  { %v56_v24 = vpop.permute.xlu0 %55   ;;  %v62_v25 = vpop.permute.xlu1 %61  }
  0x85   :  { %58 = vst.msk [vmem:[#allocation0] sm:$0x1] %vm57_vm9, %v56_v24  }
  0x86   :  { %64 = vst.msk [vmem:[#allocation0] sm:$0x1] %vm63_vm10, %v62_v25  }
  0x88   :  { %v68_v26 = vpop.permute.xlu0 %67   ;;  %v74_v27 = vpop.permute.xlu1 %73  }
  0x89   :  { %70 = vst.msk [vmem:[#allocation0] sm:$0x1] %vm69_vm11, %v68_v26  }
  0x8a   :  { %76 = vst.msk [vmem:[#allocation0] sm:$0x1] %vm75_vm12, %v74_v27  }
  0x8c   :  { %v80_v28 = vpop.permute.xlu0 %79   ;;  %v86_v29 = vpop.permute.xlu1 %85  }
  0x8d   :  { %82 = vst.msk [vmem:[#allocation0] sm:$0x1] %vm81_vm13, %v80_v28  }
  0x8e   :  { %88 = vst.msk [vmem:[#allocation0] sm:$0x1] %vm87_vm14, %v86_v29  }
  0x90   :  { %v92_v30 = vpop.permute.xlu0 %91  }
  0x91   :  { %94 = vst.msk [vmem:[#allocation0] sm:$0x1] %vm93_vm15, %v92_v30  }
  0x98   :  { %v99_v31 = vld [vmem:[#allocation0] sm:$0x1] }
  0x99   :  { %102 = vst [vmem:[%s210_s1] sm:$0x1] %v99_v31 }

// kernel: upsample_conv.3
= control target key start
LH: loop header
LB: loop body
LE: loop exit
PB: predicated region body
PF: predicated region fallthrough
CT: control target
= control target key end

     0   :  { %s254_s0 = inlined_call_operand.vmem [shape: f32[4,32,128], index: 0, kind: input, shape index: {}, may-alias: {0,3}]   ;;  %s255_s1 = inlined_call_operand.vmem [shape: f32[1,1,128], index: 1, kind: input, shape index: {}]   ;;  %s256_s2 = inlined_call_operand.vmem [shape: f32[1,1,128], index: 2, kind: input, shape index: {}]   ;;  %s257_s3 = inlined_call_operand.vmem [shape: f32[4,32,128], index: 3, kind: output, shape index: {}, may-alias: {0,3}]  }
   0x1   :  { %v14_v0 = vld [vmem:[%s254_s0] sm:$0xff]  ;;  %v15_v4 = vld [vmem:[%s254_s0 + $0x8] sm:$0xff]  ;;  %v16_v5 = vld [vmem:[%s254_s0 + $0x10] sm:$0xff] }
   0x2   :  { %v112_v1 = vld [vmem:[%s255_s1] ss:$0 sm:$0xff]  ;;  %v17_v6 = vld [vmem:[%s254_s0 + $0x18] sm:$0xff]  ;;  %v19_v11 = vld [vmem:[%s254_s0 + $0x28] sm:$0xff] }
   0x3   :  { %v143_v2 = vld [vmem:[%s256_s2] ss:$0 sm:$0xff]  ;;  %v37_v3 = vmul.f32 %v112_v1, %v14_v0  ;;  %v38_v7 = vmul.f32 %v112_v1, %v15_v4  ;;  %v39_v8 = vmul.f32 %v112_v1, %v16_v5  ;;  %v40_v9 = vmul.f32 %v112_v1, %v17_v6  ;;  %v20_v12 = vld [vmem:[%s254_s0 + $0x30] sm:$0xff]  ;;  %v21_v17 = vld [vmem:[%s254_s0 + $0x38] sm:$0xff] }
   0x4   :  { %v18_v10 = vld [vmem:[%s254_s0 + $0x20] sm:$0xff]  ;;  %v42_v15 = vmul.f32 %v112_v1, %v19_v11  ;;  %v43_v16 = vmul.f32 %v112_v1, %v20_v12  ;;  %v44_v21 = vmul.f32 %v112_v1, %v21_v17  ;;  %v23_v27 = vld [vmem:[%s254_s0 + $0x48] sm:$0xff]  ;;  %v24_v28 = vld [vmem:[%s254_s0 + $0x50] sm:$0xff] }
   0x5   :  { %v60_v13 = vadd.f32 %v143_v2, %v37_v3  ;;  %v41_v14 = vmul.f32 %v112_v1, %v18_v10  ;;  %v61_v18 = vadd.f32 %v143_v2, %v38_v7  ;;  %v62_v19 = vadd.f32 %v143_v2, %v39_v8  ;;  %v22_v22 = vld [vmem:[%s254_s0 + $0x40] sm:$0xff]  ;;  %v25_v29 = vld [vmem:[%s254_s0 + $0x58] sm:$0xff]  ;;  %v27_v35 = vld [vmem:[%s254_s0 + $0x68] sm:$0xff] }
   0x6   :  { %v63_v20 = vadd.f32 %v143_v2, %v40_v9  ;;  %v65_v25 = vadd.f32 %v143_v2, %v42_v15  ;;  %v66_v26 = vadd.f32 %v143_v2, %v43_v16  ;;  %v67_v33 = vadd.f32 %v143_v2, %v44_v21  ;;  %v26_v34 = vld [vmem:[%s254_s0 + $0x60] sm:$0xff]  ;;  %v28_v36 = vld [vmem:[%s254_s0 + $0x70] sm:$0xff] }
   0x7   :  { %v76_v23 = vmax.f32 %v60_v13, 0.0  ;;  %v64_v24 = vadd.f32 %v143_v2, %v41_v14  ;;  %v77_v30 = vmax.f32 %v61_v18, 0.0  ;;  %v78_v31 = vmax.f32 %v62_v19, 0.0 }
   0x8   :  { %v79_v32 = vmax.f32 %v63_v20, 0.0  ;;  %v81_v38 = vmax.f32 %v65_v25, 0.0  ;;  %v82_v39 = vmax.f32 %v66_v26, 0.0  ;;  %v45_v40 = vmul.f32 %v112_v1, %v22_v22 }
   0x9   :  { %92 = vst [vmem:[%s257_s3] sm:$0xff] %v76_v23  ;;  %v80_v37 = vmax.f32 %v64_v24, 0.0  ;;  %v83_v42 = vmax.f32 %v67_v33, 0.0  ;;  %v46_v43 = vmul.f32 %v112_v1, %v23_v27  ;;  %v47_v44 = vmul.f32 %v112_v1, %v24_v28 }
   0xa   :  { %v48_v45 = vmul.f32 %v112_v1, %v25_v29  ;;  %v68_v46 = vadd.f32 %v143_v2, %v45_v40  ;;  %v49_v47 = vmul.f32 %v112_v1, %v26_v34  ;;  %v50_v48 = vmul.f32 %v112_v1, %v27_v35 }
   0xb   :  { %v51_v49 = vmul.f32 %v112_v1, %v28_v36  ;;  %v69_v50 = vadd.f32 %v143_v2, %v46_v43  ;;  %v70_v51 = vadd.f32 %v143_v2, %v47_v44 }
   0xc   :  { %v71_v52 = vadd.f32 %v143_v2, %v48_v45  ;;  %v84_v54 = vmax.f32 %v68_v46, 0.0  ;;  %v72_v55 = vadd.f32 %v143_v2, %v49_v47  ;;  %v73_v56 = vadd.f32 %v143_v2, %v50_v48 }
   0xd   :  { %v74_v57 = vadd.f32 %v143_v2, %v51_v49  ;;  %v85_v58 = vmax.f32 %v69_v50, 0.0  ;;  %v86_v59 = vmax.f32 %v70_v51, 0.0 }
   0xe   :  { %v87_v60 = vmax.f32 %v71_v52, 0.0  ;;  %v88_v62 = vmax.f32 %v72_v55, 0.0  ;;  %v89_v63 = vmax.f32 %v73_v56, 0.0 }
   0xf   :  { %v90_v0 = vmax.f32 %v74_v57, 0.0 }
  0x10   :  { %v29_v41 = vld [vmem:[%s254_s0 + $0x78] sm:$0xff] }
  0x11   :  { %93 = vst [vmem:[%s257_s3 + $0x8] sm:$0xff] %v77_v30  ;;  %94 = vst [vmem:[%s257_s3 + $0x10] sm:$0xff] %v78_v31  ;;  %v52_v53 = vmul.f32 %v112_v1, %v29_v41 }
  0x12   :  { %95 = vst [vmem:[%s257_s3 + $0x18] sm:$0xff] %v79_v32  ;;  %96 = vst [vmem:[%s257_s3 + $0x20] sm:$0xff] %v80_v37 }
  0x13   :  { %97 = vst [vmem:[%s257_s3 + $0x28] sm:$0xff] %v81_v38  ;;  %98 = vst [vmem:[%s257_s3 + $0x30] sm:$0xff] %v82_v39  ;;  %v75_v61 = vadd.f32 %v143_v2, %v52_v53 }
  0x14   :  { %99 = vst [vmem:[%s257_s3 + $0x38] sm:$0xff] %v83_v42  ;;  %100 = vst [vmem:[%s257_s3 + $0x40] sm:$0xff] %v84_v54 }
  0x15   :  { %101 = vst [vmem:[%s257_s3 + $0x48] sm:$0xff] %v85_v58  ;;  %102 = vst [vmem:[%s257_s3 + $0x50] sm:$0xff] %v86_v59  ;;  %v91_v1 = vmax.f32 %v75_v61, 0.0 }
  0x16   :  { %103 = vst [vmem:[%s257_s3 + $0x58] sm:$0xff] %v87_v60  ;;  %104 = vst [vmem:[%s257_s3 + $0x60] sm:$0xff] %v88_v62 }
  0x17   :  { %105 = vst [vmem:[%s257_s3 + $0x68] sm:$0xff] %v89_v63  ;;  %106 = vst [vmem:[%s257_s3 + $0x70] sm:$0xff] %v90_v0 }
  0x18   :  { %107 = vst [vmem:[%s257_s3 + $0x78] sm:$0xff] %v91_v1 }

// kernel: upsample_conv.2
= control target key start
LH: loop header
LB: loop body
LE: loop exit
PB: predicated region body
PF: predicated region fallthrough
CT: control target
= control target key end

     0   :  { %s1553_s12 = smov 0   ;;  %s1555_s13 = smov 0   ;;  %s2233_s0 = inlined_call_operand.vmem [shape: f32[4,10,18,4], index: 0, kind: input, shape index: {}]   ;;  %s2234_s1 = inlined_call_operand.vmem [shape: f32[36,32], index: 1, kind: input, shape index: {}]   ;;  %s2235_s2 = inlined_call_operand.vmem [shape: f32[4,128,32], index: 2, kind: output, shape index: {0}]   ;;  %s2236_s3 = inlined_call_operand.vmem [shape: f32[4,2,32], index: 3, kind: output, shape index: {1}]  }
   0x1   :  { %s1557_s14 = smov 0   ;;  %s1559_s15 = smov 0  }
   0x2   :  { %s1561_s16 = smov 0  }
   0x3 LB: > { %s23_s17 = sadd.s32 1, %s1515_s14  ;;  %s26_s18 = sadd.s32 1, %s1519_s15  ;;  %s1523_s16 = sphi %s1561_s16, %s14_s16   ;;  %s1519_s15 = sphi %s1559_s15, %s2240_s15   ;;  %s1515_s14 = sphi %s1557_s14, %s2239_s14   ;;  %s1511_s13 = sphi %s1555_s13, %s2238_s13   ;;  %s1507_s12 = sphi %s1553_s12, %s2237_s12  }
   0x4   : > { %p24_p0 = scmp.ge.s32.totalorder %s23_s17, 2  ;;  %p1343_p1 = scmp.ge.s32.totalorder %s1523_s16, 1 }
   0x5   : > { %p168_p2 = scmp.lt.s32.totalorder %s1523_s16, 5 }
   0x6   : > { %s2242_s17 = smov (%p24_p0, %s23_s17), 0  ;;  %s2244_s18 = smov (!%p24_p0, %s26_s18), %s1519_s15 }
   0x7   : > { %p169_p3 = pnand %p1343_p1, %p168_p2  ;;  %p28_p4 = scmp.ge.s32.totalorder %s2244_s18, 2 }
   0x8   : > { %s1344_s19 = sshll.u32 (!%p169_p3), %s1511_s13, 1  ;;  %s1525_s25 = smov (!%p169_p3), 12  }
   0x9   : > { %s2246_s18 = smov (%p28_p4, %s2244_s18), 0  ;;  %172 = sbr.rel (%p169_p3) target bundleno = 604 (0x25c), region = 28 }
   0xa   : > { %s203_s20 = sadd.s32 (!%p169_p3), %s1507_s12, %s1344_s19  ;;  %s1526_s26 = smov (!%p169_p3), 8  }
   0xb   : > { %p204_p5 = scmp.lt.s32.totalorder (!%p169_p3), %s203_s20, 3  ;;  %s1527_s27 = smov (!%p169_p3), 4  }
   0xc   : > { %s1528_s28 = smov (!%p169_p3), 16   ;;  %s1529_s29 = smov (!%p169_p3), 20  }
   0xd   : > { %s1530_s30 = smov (!%p169_p3), 24   ;;  %s1531_s12 = smov (!%p169_p3), 28  }
   0xe   : > { %s2248_s20 = smov (!%p204_p5, %s203_s20), 3  ;;  %vm371_vm0 = vcmask 1045504   ;;  %vm282_vm1 = vcmask 1046528   ;;  %v914_v28 = vld [vmem:[%s2234_s1 + $0x20] sm:$0xf]  ;;  %vm964_vm2 = vcmask 1043456  }
   0xf   : > { %s1436_s21 = smul.u32 240, %s2248_s20  ;;  %1392 = vmatprep.subr.msk.mxu0 %vm964_vm2, %v914_v28  ;;  %1426 = vmatprep.subr.msk.mxu1 %vm964_vm2, %v914_v28  ;;  %v913_v31 = vld [vmem:[%s2234_s1 + $0x18] sm:$0xff]  ;;  %v912_v33 = vld [vmem:[%s2234_s1 + $0x10] sm:$0xff]  ;;  %v911_v35 = vld [vmem:[%s2234_s1 + $0x8] sm:$0xff]  ;;  %vm774_vm3 = vcmask 31744   ;;  %vm791_vm4 = vcmask 64512  }
  0x10   : > { %1393 = vmatpush3.msk.msra.mxu0 %vm964_vm2, %v914_v28  ;;  %1431 = vmatpush3.msk.msra.mxu1 %vm964_vm2, %v914_v28  ;;  %v910_v39 = vld [vmem:[%s2234_s1] sm:$0xff]  ;;  %vm808_vm5 = vcmask 97280   ;;  %vm825_vm6 = vcmask 130048   ;;  %vm842_vm7 = vcmask 162816   ;;  %vm859_vm8 = vcmask 195584   ;;  %s1370_s22 = sshll.u32 %s2248_s20, 7 }
  0x11   : > { %s1589_s24 = scalar_lea.vmem %s2233_s0, %s1436_s21  ;;  %1394 = vmatprep.subr.mxu0 %v913_v31  ;;  %1427 = vmatprep.subr.mxu1 %v913_v31  ;;  %s1532_s21 = smov 32   ;;  %vm876_vm9 = vcmask 228352   ;;  %vm893_vm10 = vcmask 261120   ;;  %vm915_vm11 = vcmask 293888   ;;  %vm1219_vm12 = vcmask 1040384  }
  0x12   : > { %v1592_v0 = vld [vmem:[%s1589_s24 + $0x20] sm:$0xff]  ;;  %v1595_v1 = vld [vmem:[%s1589_s24 + $0x18] sm:$0xff]  ;;  %v1605_v3 = vld [vmem:[%s1589_s24 + $0x8] sm:$0xff]  ;;  %1395 = vmatpush3.msra.mxu0 %v913_v31  ;;  %1432 = vmatpush3.msra.mxu1 %v913_v31  ;;  %vm1221_vm13 = vcmask 254976  }
  0x13   : > { %v1598_v2 = vld [vmem:[%s1589_s24] sm:$0xff]  ;;  %464 = vrot.lane.b32.xlu1 %v1592_v0, %s1525_s25  ;;  %462 = vrot.lane.b32.xlu0 %v1595_v1, %s1525_s25  ;;  %v230_v6 = vld [vmem:[%s1589_s24 + $0x10] sm:$0x3]  ;;  %v373_v7 = vrot.slane %v1605_v3, 2  ;;  %v284_v8 = vrot.slane %v1605_v3, 1  ;;  %v288_v15 = vrot.slane %v1595_v1, 1 }
  0x14   : > { %v372_v4 = vrot.slane %v1598_v2, 2  ;;  %v283_v5 = vrot.slane %v1598_v2, 1  ;;  %v375_v9 = vrot.slane %v230_v6, 2  ;;  %v286_v10 = vrot.slane %v230_v6, 1  ;;  %v233_v17 = vld [vmem:[%s1589_s24 + $0x28] sm:$0x3]  ;;  %1396 = vmatprep.subr.mxu0 %v912_v33  ;;  %1428 = vmatprep.subr.mxu1 %v912_v33 }
  0x15   : > { %v289_v16 = vrot.slane %v1592_v0, 1  ;;  %v377_v19 = vrot.slane %v1595_v1, 2  ;;  %v378_v20 = vrot.slane %v1592_v0, 2  ;;  %v291_v21 = vrot.slane %v233_v17, 1  ;;  %v1635_v25 = vld [vmem:[%s1589_s24 + $0x30] sm:$0xff]  ;;  %v1639_v27 = vld [vmem:[%s1589_s24 + $0x38] sm:$0xff]  ;;  %1397 = vmatpush3.msra.mxu0 %v912_v33  ;;  %1433 = vmatpush3.msra.mxu1 %v912_v33 }
  0x16   : > { %v374_v11 = vsel %vm371_vm0, %v372_v4, %v373_v7  ;;  %v285_v12 = vsel %vm282_vm1, %v283_v5, %v284_v8  ;;  %v376_v13 = vsel %vm371_vm0, %v373_v7, %v375_v9  ;;  %v287_v14 = vsel %vm282_vm1, %v284_v8, %v286_v10  ;;  %v236_v34 = vld [vmem:[%s1589_s24 + $0x40] sm:$0x3]  ;;  %1398 = vmatprep.subr.mxu0 %v911_v35  ;;  %v1686_v44 = vld [vmem:[%s1589_s24 + $0x48] sm:$0xff]  ;;  %v1689_v45 = vld [vmem:[%s1589_s24 + $0x50] sm:$0xff] }
  0x17   : > { %412 = vrot.lane.b32.xlu1 %v374_v11, %s1526_s26  ;;  %323 = vrot.lane.b32.xlu0 %v285_v12, %s1527_s27  ;;  %v290_v18 = vsel %vm282_vm1, %v288_v15, %v289_v16  ;;  %v379_v22 = vsel %vm371_vm0, %v377_v19, %v378_v20  ;;  %v292_v23 = vsel %vm282_vm1, %v289_v16, %v291_v21  ;;  %v380_v24 = vrot.slane %v233_v17, 2  ;;  %v239_v49 = vld [vmem:[%s1589_s24 + $0x58] sm:$0x3]  ;;  %v1721_v57 = vld [vmem:[%s1589_s24 + $0x60] sm:$0xff] }
  0x18   : > { %v293_v29 = vrot.slane %v1635_v25, 1  ;;  %v294_v30 = vrot.slane %v1639_v27, 1  ;;  %v382_v36 = vrot.slane %v1635_v25, 2  ;;  %v383_v37 = vrot.slane %v1639_v27, 2  ;;  %1429 = vmatprep.subr.mxu1 %v911_v35  ;;  %1399 = vmatpush3.msra.mxu0 %v911_v35  ;;  %v1724_v58 = vld [vmem:[%s1589_s24 + $0x68] sm:$0xff]  ;;  %v1758_v12 = vld [vmem:[%s1589_s24 + $0x78] sm:$0xff] }
  0x19   : > { %v381_v26 = vsel %vm371_vm0, %v378_v20, %v380_v24  ;;  %v296_v38 = vrot.slane %v236_v34, 1  ;;  %1434 = vmatpush3.msra.mxu1 %v911_v35  ;;  %1400 = vmatprep.subr.mxu0 %v910_v39  ;;  %v385_v42 = vrot.slane %v236_v34, 2  ;;  %v298_v46 = vrot.slane %v1686_v44, 1  ;;  %v242_v62 = vld [vmem:[%s1589_s24 + $0x70] sm:$0x3]  ;;  %v1761_v15 = vld [vmem:[%s1589_s24 + $0x80] sm:$0xff] }
  0x1a   : > { %v295_v32 = vsel %vm282_vm1, %v293_v29, %v294_v30  ;;  %v384_v40 = vsel %vm371_vm0, %v382_v36, %v383_v37  ;;  %1430 = vmatprep.subr.mxu1 %v910_v39  ;;  %1401 = vmatpush3.msra.mxu0 %v910_v39  ;;  %v299_v47 = vrot.slane %v1689_v45, 1  ;;  %v387_v50 = vrot.slane %v1686_v44, 2 }
  0x1b   : > { %414 = vrot.lane.b32.xlu1 %v376_v13, %s1526_s26  ;;  %325 = vrot.lane.b32.xlu0 %v287_v14, %s1527_s27  ;;  %v297_v41 = vsel %vm282_vm1, %v294_v30, %v296_v38  ;;  %v386_v43 = vsel %vm371_vm0, %v383_v37, %v385_v42  ;;  %v388_v51 = vrot.slane %v1689_v45, 2  ;;  %v301_v52 = vrot.slane %v239_v49, 1 }
  0x1c   : > { %1435 = vmatpush3.msra.mxu1 %v910_v39  ;;  %v300_v48 = vsel %vm282_vm1, %v298_v46, %v299_v47  ;;  %v390_v55 = vrot.slane %v239_v49, 2  ;;  %v303_v59 = vrot.slane %v1721_v57, 1  ;;  %v304_v60 = vrot.slane %v1724_v58, 1 }
  0x1d   : > { %v389_v53 = vsel %vm371_vm0, %v387_v50, %v388_v51  ;;  %v302_v54 = vsel %vm282_vm1, %v299_v47, %v301_v52  ;;  %v392_v63 = vrot.slane %v1721_v57, 2  ;;  %v393_v4 = vrot.slane %v1724_v58, 2  ;;  %v1808_v47 = vld [vmem:[%s1589_s24 + $0x90] sm:$0xff]  ;;  %v1816_v50 = vld [vmem:[%s1589_s24 + $0x98] sm:$0xff] }
  0x1e   : > { %v391_v56 = vsel %vm371_vm0, %v388_v51, %v390_v55  ;;  %v305_v61 = vsel %vm282_vm1, %v303_v59, %v304_v60  ;;  %v306_v5 = vrot.slane %v242_v62, 1  ;;  %v395_v8 = vrot.slane %v242_v62, 2 }
  0x1f   : > { %327 = vrot.lane.b32.xlu1 %v290_v18, %s1527_s27  ;;  %516 = vrot.lane.b32.xlu0 %v290_v18, %s1528_s28  ;;  %v394_v6 = vsel %vm371_vm0, %v392_v63, %v393_v4  ;;  %v308_v16 = vrot.slane %v1758_v12, 1  ;;  %v309_v17 = vrot.slane %v1761_v15, 1  ;;  %v397_v24 = vrot.slane %v1758_v12, 2 }
  0x20   : > { %v307_v7 = vsel %vm282_vm1, %v304_v60, %v306_v5  ;;  %v396_v9 = vsel %vm371_vm0, %v393_v4, %v395_v8  ;;  %v313_v55 = vrot.slane %v1808_v47, 1 }
  0x21   : > { %v310_v20 = vsel %vm282_vm1, %v308_v16, %v309_v17 }
  0x23   : > { %569 = vrot.lane.b32.xlu1 %v379_v22, %s1529_s29  ;;  %518 = vrot.lane.b32.xlu0 %v292_v23, %s1528_s28 }
  0x27   : > { %416 = vrot.lane.b32.xlu1 %v379_v22, %s1526_s26  ;;  %329 = vrot.lane.b32.xlu0 %v292_v23, %s1527_s27  ;;  %v245_v23 = vld [vmem:[%s1589_s24 + $0x88] sm:$0x3] }
  0x28   : > { %v311_v28 = vrot.slane %v245_v23, 1  ;;  %v400_v35 = vrot.slane %v245_v23, 2 }
  0x2b   : > { %619 = vrot.lane.b32.xlu1 %v1635_v25, %s1530_s30  ;;  %571 = vrot.lane.b32.xlu0 %v381_v26, %s1529_s29 }
  0x2f   : > { %466 = vrot.lane.b32.xlu1 %v1635_v25, %s1525_s25  ;;  %418 = vrot.lane.b32.xlu0 %v381_v26, %s1526_s26  ;;  %v398_v26 = vrot.slane %v1761_v15, 2 }
  0x31   : > { %v399_v31 = vsel %vm371_vm0, %v397_v24, %v398_v26  ;;  %v401_v38 = vsel %vm371_vm0, %v398_v26, %v400_v35 }
  0x33   : > { %673 = vrot.lane.b32.xlu1 %v295_v32, %s1531_s12  ;;  %621 = vrot.lane.b32.xlu0 %v1639_v27, %s1530_s30 }
  0x37   : > { %520 = vrot.lane.b32.xlu1 %v295_v32, %s1528_s28  ;;  %468 = vrot.lane.b32.xlu0 %v1639_v27, %s1525_s25 }
  0x3b   : > { %726 = vrot.lane.b32.xlu1 %v384_v40, %s1532_s21  ;;  %675 = vrot.lane.b32.xlu0 %v297_v41, %s1531_s12 }
  0x3f   : > { %522 = vrot.lane.b32.xlu1 %v297_v41, %s1528_s28  ;;  %331 = vrot.lane.b32.xlu0 %v295_v32, %s1527_s27  ;;  %v312_v32 = vsel %vm282_vm1, %v309_v17, %v311_v28 }
  0x43   : > { %728 = vrot.lane.b32.xlu1 %v386_v43, %s1532_s21  ;;  %573 = vrot.lane.b32.xlu0 %v384_v40, %s1529_s29 }
  0x47   : > { %420 = vrot.lane.b32.xlu1 %v384_v40, %s1526_s26  ;;  %333 = vrot.lane.b32.xlu0 %v297_v41, %s1527_s27 }
  0x4b   : > { %623 = vrot.lane.b32.xlu1 %v1686_v44, %s1530_s30  ;;  %575 = vrot.lane.b32.xlu0 %v386_v43, %s1529_s29 }
  0x4f   : > { %470 = vrot.lane.b32.xlu1 %v1686_v44, %s1525_s25  ;;  %422 = vrot.lane.b32.xlu0 %v386_v43, %s1526_s26 }
  0x53   : > { %677 = vrot.lane.b32.xlu1 %v300_v48, %s1531_s12  ;;  %625 = vrot.lane.b32.xlu0 %v1689_v45, %s1530_s30 }
  0x57   : > { %524 = vrot.lane.b32.xlu1 %v300_v48, %s1528_s28  ;;  %472 = vrot.lane.b32.xlu0 %v1689_v45, %s1525_s25 }
  0x5b   : > { %730 = vrot.lane.b32.xlu1 %v389_v53, %s1532_s21  ;;  %679 = vrot.lane.b32.xlu0 %v302_v54, %s1531_s12 }
  0x5f   : > { %526 = vrot.lane.b32.xlu1 %v302_v54, %s1528_s28  ;;  %335 = vrot.lane.b32.xlu0 %v300_v48, %s1527_s27 }
  0x63   : > { %732 = vrot.lane.b32.xlu1 %v391_v56, %s1532_s21  ;;  %577 = vrot.lane.b32.xlu0 %v389_v53, %s1529_s29 }
  0x67   : > { %424 = vrot.lane.b32.xlu1 %v389_v53, %s1526_s26  ;;  %337 = vrot.lane.b32.xlu0 %v302_v54, %s1527_s27 }
  0x6b   : > { %627 = vrot.lane.b32.xlu1 %v1721_v57, %s1530_s30  ;;  %579 = vrot.lane.b32.xlu0 %v391_v56, %s1529_s29 }
  0x6f   : > { %474 = vrot.lane.b32.xlu1 %v1721_v57, %s1525_s25  ;;  %426 = vrot.lane.b32.xlu0 %v391_v56, %s1526_s26  ;;  %v314_v56 = vrot.slane %v1816_v50, 1 }
  0x71   : > { %v315_v63 = vsel %vm282_vm1, %v313_v55, %v314_v56 }
  0x73   : > { %681 = vrot.lane.b32.xlu1 %v305_v61, %s1531_s12  ;;  %629 = vrot.lane.b32.xlu0 %v1724_v58, %s1530_s30 }
  0x77   : > { %528 = vrot.lane.b32.xlu1 %v305_v61, %s1528_s28  ;;  %476 = vrot.lane.b32.xlu0 %v1724_v58, %s1525_s25 }
  0x7b   : > { %734 = vrot.lane.b32.xlu1 %v394_v6, %s1532_s21  ;;  %683 = vrot.lane.b32.xlu0 %v307_v7, %s1531_s12 }
  0x7f   : > { %530 = vrot.lane.b32.xlu1 %v307_v7, %s1528_s28  ;;  %339 = vrot.lane.b32.xlu0 %v305_v61, %s1527_s27 }
  0x83   : > { %736 = vrot.lane.b32.xlu1 %v396_v9, %s1532_s21  ;;  %581 = vrot.lane.b32.xlu0 %v394_v6, %s1529_s29 }
  0x85   : > { %v1753_v10 = vpop.permute.xlu1 %464  ;;  %v463_v11 = vpop.permute.xlu0 %462 }
  0x87   : > { %428 = vrot.lane.b32.xlu1 %v394_v6, %s1526_s26  ;;  %341 = vrot.lane.b32.xlu0 %v307_v7, %s1527_s27  ;;  %v248_v7 = vld [vmem:[%s1589_s24 + $0xa0] sm:$0x3] }
  0x88   : > { %v405_v26 = vrot.slane %v248_v7, 2 }
  0x89   : > { %v413_v13 = vpop.permute.xlu1 %412  ;;  %v324_v14 = vpop.permute.xlu0 %323 }
  0x8a   : > { %v775_v41 = vsel %vm774_vm3, %v1598_v2, %v324_v14  ;;  %v316_v14 = vrot.slane %v248_v7, 1 }
  0x8b   : > { %631 = vrot.lane.b32.xlu1 %v1758_v12, %s1530_s30  ;;  %583 = vrot.lane.b32.xlu0 %v396_v9, %s1529_s29  ;;  %v792_v46 = vsel %vm791_vm4, %v775_v41, %v413_v13  ;;  %v402_v13 = vrot.slane %v1808_v47, 2  ;;  %v1883_v41 = vld [vmem:[%s1589_s24 + $0xa8] sm:$0xff] }
  0x8c   : > { %v809_v2 = vsel %vm808_vm5, %v792_v46, %v463_v11 }
  0x8d   : > { %v1768_v18 = vpop.permute.xlu1 %414  ;;  %v326_v19 = vpop.permute.xlu0 %325 }
  0x8e   : > { %v776_v52 = vsel %vm774_vm3, %v1605_v3, %v326_v19 }
  0x8f   : > { %478 = vrot.lane.b32.xlu1 %v1758_v12, %s1525_s25  ;;  %430 = vrot.lane.b32.xlu0 %v396_v9, %s1526_s26  ;;  %v793_v3 = vsel %vm791_vm4, %v776_v52, %v1768_v18 }
  0x90   : > { %v810_v4 = vsel %vm808_vm5, %v793_v3, %v1753_v10  ;;  %v403_v10 = vrot.slane %v1816_v50, 2 }
  0x91   : > { %v1774_v21 = vpop.permute.xlu1 %327  ;;  %v517_v22 = vpop.permute.xlu0 %516 }
  0x92   : > { %v826_v51 = vsel %vm825_vm6, %v809_v2, %v517_v22  ;;  %v317_v22 = vsel %vm282_vm1, %v314_v56, %v316_v14  ;;  %v1892_v2 = vld [vmem:[%s1589_s24 + $0xb0] sm:$0xff] }
  0x93   : > { %685 = vrot.lane.b32.xlu1 %v310_v20, %s1531_s12  ;;  %633 = vrot.lane.b32.xlu0 %v1761_v15, %s1530_s30 }
  0x95   : > { %v570_v29 = vpop.permute.xlu1 %569  ;;  %v519_v30 = vpop.permute.xlu0 %518 }
  0x96   : > { %v843_v53 = vsel %vm842_vm7, %v826_v51, %v570_v29  ;;  %v827_v8 = vsel %vm825_vm6, %v810_v4, %v519_v30  ;;  %v406_v30 = vsel %vm371_vm0, %v403_v10, %v405_v26  ;;  %v319_v51 = vrot.slane %v1892_v2, 1 }
  0x97   : > { %532 = vrot.lane.b32.xlu1 %v310_v20, %s1528_s28  ;;  %480 = vrot.lane.b32.xlu0 %v1761_v15, %s1525_s25 }
  0x99   : > { %v1787_v33 = vpop.permute.xlu1 %416  ;;  %v1789_v34 = vpop.permute.xlu0 %329 }
  0x9a   : > { %v778_v55 = vsel %vm774_vm3, %v1592_v0, %v1789_v34  ;;  %v251_v0 = vld [vmem:[%s1589_s24 + $0xb8] sm:$0x3] }
  0x9b   : > { %738 = vrot.lane.b32.xlu1 %v399_v31, %s1532_s21  ;;  %687 = vrot.lane.b32.xlu0 %v312_v32, %s1531_s12  ;;  %v321_v4 = vrot.slane %v251_v0, 1 }
  0x9d   : > { %v620_v36 = vpop.permute.xlu1 %619  ;;  %v572_v37 = vpop.permute.xlu0 %571 }
  0x9e   : > { %v860_v54 = vsel %vm859_vm8, %v843_v53, %v620_v36  ;;  %v844_v9 = vsel %vm842_vm7, %v827_v8, %v572_v37  ;;  %v777_v37 = vsel %vm774_vm3, %v1595_v1, %v1774_v21 }
  0x9f   : > { %534 = vrot.lane.b32.xlu1 %v312_v32, %s1528_s28  ;;  %343 = vrot.lane.b32.xlu0 %v310_v20, %s1527_s27  ;;  %v404_v20 = vsel %vm371_vm0, %v402_v13, %v403_v10  ;;  %v322_v13 = vsel %vm282_vm1, %v319_v51, %v321_v4 }
  0xa1   : > { %v1796_v39 = vpop.permute.xlu1 %466  ;;  %v1798_v40 = vpop.permute.xlu0 %418 }
  0xa2   : > { %v795_v56 = vsel %vm791_vm4, %v778_v55, %v1798_v40 }
  0xa3   : > { %740 = vrot.lane.b32.xlu1 %v401_v38, %s1532_s21  ;;  %585 = vrot.lane.b32.xlu0 %v399_v31, %s1529_s29 }
  0xa5   : > { %v674_v42 = vpop.permute.xlu1 %673  ;;  %v622_v43 = vpop.permute.xlu0 %621 }
  0xa6   : > { %v877_v59 = vsel %vm876_vm9, %v860_v54, %v674_v42  ;;  %v861_v11 = vsel %vm859_vm8, %v844_v9, %v622_v43 }
  0xa7   : > { %432 = vrot.lane.b32.xlu1 %v399_v31, %s1526_s26  ;;  %345 = vrot.lane.b32.xlu0 %v312_v32, %s1527_s27 }
  0xa9   : > { %v1811_v48 = vpop.permute.xlu1 %520  ;;  %v1813_v49 = vpop.permute.xlu0 %468 }
  0xab   : > { %635 = vrot.lane.b32.xlu1 %v1808_v47, %s1530_s30  ;;  %587 = vrot.lane.b32.xlu0 %v401_v38, %s1529_s29 }
  0xad   : > { %v727_v60 = vpop.permute.xlu1 %726  ;;  %v676_v61 = vpop.permute.xlu0 %675 }
  0xae   : > { %v894_v62 = vsel %vm893_vm10, %v877_v59, %v727_v60  ;;  %v878_v16 = vsel %vm876_vm9, %v861_v11, %v676_v61  ;;  %v812_v60 = vsel %vm808_vm5, %v795_v56, %v1813_v49  ;;  %v408_v49 = vrot.slane %v1892_v2, 2  ;;  %v254_v56 = vld [vmem:[%s1589_s24 + $0xd0] sm:$0x3] }
  0xaf   : > { %482 = vrot.lane.b32.xlu1 %v1808_v47, %s1525_s25  ;;  %434 = vrot.lane.b32.xlu0 %v401_v38, %s1526_s26  ;;  %v794_v38 = vsel %vm791_vm4, %v777_v37, %v1787_v33 }
  0xb0   : > { %1402 = vmatprep.mubr.msk.f32.mxu0 %vm915_vm11, %v894_v62  ;;  %v811_v42 = vsel %vm808_vm5, %v794_v38, %v1796_v39  ;;  %v318_v39 = vrot.slane %v1883_v41, 1 }
  0xb1   : > { %v1839_v5 = vpop.permute.xlu1 %522  ;;  %v1841_v6 = vpop.permute.xlu0 %331  ;;  %v828_v1 = vsel %vm825_vm6, %v811_v42, %v1811_v48  ;;  %v253_v42 = vld [vmem:[%s1589_s24 + $0xc8] sm:$0xff] }
  0xb2   : > { %v320_v59 = vsel %vm282_vm1, %v318_v39, %v319_v51  ;;  %v829_v34 = vsel %vm825_vm6, %v812_v60, %v1839_v5  ;;  %v565_v60 = vrot.slane %v253_v42, 2 }
  0xb3   : > { %689 = vrot.lane.b32.xlu1 %v315_v63, %s1531_s12  ;;  %637 = vrot.lane.b32.xlu0 %v1816_v50, %s1530_s30 }
  0xb5   : > { %v729_v17 = vpop.permute.xlu1 %728  ;;  %v574_v18 = vpop.permute.xlu0 %573 }
  0xb6   : > { %v895_v19 = vsel %vm893_vm10, %v878_v16, %v729_v17  ;;  %v845_v21 = vsel %vm842_vm7, %v828_v1, %v574_v18  ;;  %v410_v16 = vrot.slane %v251_v0, 2  ;;  %v514_v0 = vrot.slane %v254_v56, 1 }
  0xb7   : > { %536 = vrot.lane.b32.xlu1 %v315_v63, %s1528_s28  ;;  %484 = vrot.lane.b32.xlu0 %v1816_v50, %s1525_s25 }
  0xb8   : > { %1403 = vmatmul.mubr.msk.f32.vlgmr.msra.gmra.mxu0 %vm915_vm11, %v895_v19  ;;  %v411_v19 = vsel %vm371_vm0, %v408_v49, %v410_v16  ;;  %v256_v16 = vld [vmem:[%s1589_s24 + $0xe0] sm:$0xff] }
  0xb9   : > { %v1860_v23 = vpop.permute.xlu1 %420  ;;  %v1862_v24 = vpop.permute.xlu0 %333 }
  0xbb   : > { %742 = vrot.lane.b32.xlu1 %v404_v20, %s1532_s21  ;;  %691 = vrot.lane.b32.xlu0 %v317_v22, %s1531_s12 }
  0xbd   : > { %v624_v28 = vpop.permute.xlu1 %623  ;;  %v576_v29 = vpop.permute.xlu0 %575 }
  0xbe   : > { %v862_v33 = vsel %vm859_vm8, %v845_v21, %v624_v28  ;;  %v846_v62 = vsel %vm842_vm7, %v829_v34, %v576_v29  ;;  %v779_v29 = vsel %vm774_vm3, %v1635_v25, %v1841_v6  ;;  %v512_v21 = vrot.slane %v253_v42, 1 }
  0xbf   : > { %538 = vrot.lane.b32.xlu1 %v317_v22, %s1528_s28  ;;  %347 = vrot.lane.b32.xlu0 %v315_v63, %s1527_s27  ;;  %v407_v63 = vrot.slane %v1883_v41, 2 }
  0xc1   : > { %v1869_v31 = vpop.permute.xlu1 %470  ;;  %v1871_v32 = vpop.permute.xlu0 %422  ;;  %v409_v11 = vsel %vm371_vm0, %v407_v63, %v408_v49  ;;  %v515_v63 = vsel %vm282_vm1, %v512_v21, %v514_v0 }
  0xc3   : > { %744 = vrot.lane.b32.xlu1 %v406_v30, %s1532_s21  ;;  %589 = vrot.lane.b32.xlu0 %v404_v20, %s1529_s29 }
  0xc5   : > { %v678_v35 = vpop.permute.xlu1 %677  ;;  %v626_v36 = vpop.permute.xlu0 %625 }
  0xc6   : > { %v879_v52 = vsel %vm876_vm9, %v862_v33, %v678_v35  ;;  %v863_v40 = vsel %vm859_vm8, %v846_v62, %v626_v36  ;;  %v252_v35 = vld [vmem:[%s1589_s24 + $0xc0] sm:$0xff] }
  0xc7   : > { %436 = vrot.lane.b32.xlu1 %v404_v20, %s1526_s26  ;;  %349 = vrot.lane.b32.xlu0 %v317_v22, %s1527_s27 }
  0xc9   : > { %v1887_v43 = vpop.permute.xlu1 %524  ;;  %v1889_v46 = vpop.permute.xlu0 %472 }
  0xcb   : > { %639 = vrot.lane.b32.xlu1 %v1883_v41, %s1530_s30  ;;  %591 = vrot.lane.b32.xlu0 %v406_v30, %s1529_s29 }
  0xcd   : > { %v731_v53 = vpop.permute.xlu1 %730  ;;  %v680_v54 = vpop.permute.xlu0 %679 }
  0xce   : > { %v896_v48 = vsel %vm893_vm10, %v879_v52, %v731_v53  ;;  %v880_v7 = vsel %vm876_vm9, %v863_v40, %v680_v54 }
  0xcf   : > { %486 = vrot.lane.b32.xlu1 %v1883_v41, %s1525_s25  ;;  %438 = vrot.lane.b32.xlu0 %v406_v30, %s1526_s26  ;;  %v796_v30 = vsel %vm791_vm4, %v779_v29, %v1860_v23  ;;  %v511_v23 = vrot.slane %v252_v35, 1 }
  0xd0   : > { %1405 = vmatprep.mubr.msk.f32.mxu0 %vm915_vm11, %v896_v48  ;;  %v813_v36 = vsel %vm808_vm5, %v796_v30, %v1869_v31 }
  0xd1   : > { %v1917_v61 = vpop.permute.xlu1 %526  ;;  %v1919_v3 = vpop.permute.xlu0 %335  ;;  %v830_v1 = vsel %vm825_vm6, %v813_v36, %v1887_v43  ;;  %v780_v43 = vsel %vm774_vm3, %v1639_v27, %v1862_v24  ;;  %v513_v53 = vsel %vm282_vm1, %v511_v23, %v512_v21  ;;  %v722_v36 = vrot.slane %v256_v16, 2 }
  0xd2   : > { %v797_v52 = vsel %vm791_vm4, %v780_v43, %v1871_v32 }
  0xd3   : > { %693 = vrot.lane.b32.xlu1 %v320_v59, %s1531_s12  ;;  %641 = vrot.lane.b32.xlu0 %v1892_v2, %s1530_s30  ;;  %v814_v54 = vsel %vm808_vm5, %v797_v52, %v1889_v46 }
  0xd4   : > { %v831_v27 = vsel %vm825_vm6, %v814_v54, %v1917_v61 }
  0xd5   : > { %v733_v8 = vpop.permute.xlu1 %732  ;;  %v578_v9 = vpop.permute.xlu0 %577 }
  0xd6   : > { %v897_v5 = vsel %vm893_vm10, %v880_v7, %v733_v8  ;;  %v847_v25 = vsel %vm842_vm7, %v830_v1, %v578_v9  ;;  %v567_v7 = vrot.slane %v254_v56, 2 }
  0xd7   : > { %540 = vrot.lane.b32.xlu1 %v320_v59, %s1528_s28  ;;  %488 = vrot.lane.b32.xlu0 %v1892_v2, %s1525_s25 }
  0xd8   : > { %1406 = vmatmul.mubr.msk.f32.gmra.mxu0 %vm915_vm11, %v897_v5  ;;  %v568_v5 = vsel %vm371_vm0, %v565_v60, %v567_v7 }
  0xd9   : > { %v1939_v10 = vpop.permute.xlu1 %424  ;;  %v1941_v14 = vpop.permute.xlu0 %337 }
  0xdb   : > { %746 = vrot.lane.b32.xlu1 %v409_v11, %s1532_s21  ;;  %695 = vrot.lane.b32.xlu0 %v322_v13, %s1531_s12 }
  0xdd   : > { %v628_v17 = vpop.permute.xlu1 %627  ;;  %v580_v18 = vpop.permute.xlu0 %579 }
  0xde   : > { %v864_v6 = vsel %vm859_vm8, %v847_v25, %v628_v17  ;;  %v848_v24 = vsel %vm842_vm7, %v831_v27, %v580_v18  ;;  %v255_v17 = vld [vmem:[%s1589_s24 + $0xd8] sm:$0xff]  ;;  %v257_v18 = vld [vmem:[%s1589_s24 + $0xe8] sm:$0x3] }
  0xdf   : > { %542 = vrot.lane.b32.xlu1 %v322_v13, %s1528_s28  ;;  %351 = vrot.lane.b32.xlu0 %v320_v59, %s1527_s27  ;;  %v564_v59 = vrot.slane %v252_v35, 2  ;;  %v724_v23 = vrot.slane %v257_v18, 2 }
  0xe1   : > { %v1948_v20 = vpop.permute.xlu1 %474  ;;  %v1950_v22 = vpop.permute.xlu0 %426  ;;  %v566_v61 = vsel %vm371_vm0, %v564_v59, %v565_v60 }
  0xe3   : > { %748 = vrot.lane.b32.xlu1 %v411_v19, %s1532_s21  ;;  %593 = vrot.lane.b32.xlu0 %v409_v11, %s1529_s29 }
  0xe5   : > { %v682_v26 = vpop.permute.xlu1 %681  ;;  %v630_v28 = vpop.permute.xlu0 %629 }
  0xe6   : > { %v881_v31 = vsel %vm876_vm9, %v864_v6, %v682_v26  ;;  %v865_v32 = vsel %vm859_vm8, %v848_v24, %v630_v28  ;;  %v668_v26 = vrot.slane %v255_v17, 1  ;;  %v671_v28 = vrot.slane %v257_v18, 1 }
  0xe7   : > { %440 = vrot.lane.b32.xlu1 %v409_v11, %s1526_s26  ;;  %353 = vrot.lane.b32.xlu0 %v322_v13, %s1527_s27 }
  0xe9   : > { %v1964_v37 = vpop.permute.xlu1 %528  ;;  %v1966_v38 = vpop.permute.xlu0 %476 }
  0xeb   : > { %643 = vrot.lane.b32.xlu1 %v252_v35, %s1530_s30  ;;  %595 = vrot.lane.b32.xlu0 %v411_v19, %s1529_s29 }
  0xed   : > { %v735_v33 = vpop.permute.xlu1 %734  ;;  %v684_v39 = vpop.permute.xlu0 %683 }
  0xee   : > { %v898_v51 = vsel %vm893_vm10, %v881_v31, %v735_v33  ;;  %v882_v46 = vsel %vm876_vm9, %v865_v32, %v684_v39  ;;  %v725_v39 = vsel %vm371_vm0, %v722_v36, %v724_v23 }
  0xef   : > { %490 = vrot.lane.b32.xlu1 %v252_v35, %s1525_s25  ;;  %442 = vrot.lane.b32.xlu0 %v411_v19, %s1526_s26  ;;  %v669_v19 = vrot.slane %v256_v16, 1  ;;  %v781_v35 = vsel %vm774_vm3, %v1686_v44, %v1919_v3  ;;  %s1350_s26 = sshll.u32 %s2248_s20, 1 }
  0xf0   : > { %1408 = vmatprep.mubr.msk.f32.mxu0 %vm915_vm11, %v898_v51  ;;  %v798_v1 = vsel %vm791_vm4, %v781_v35, %v1939_v10 }
  0xf1   : > { %v1988_v48 = vpop.permute.xlu1 %530  ;;  %v1990_v55 = vpop.permute.xlu0 %339  ;;  %v672_v25 = vsel %vm282_vm1, %v669_v19, %v671_v28  ;;  %v670_v6 = vsel %vm282_vm1, %v668_v26, %v669_v19  ;;  %v815_v21 = vsel %vm808_vm5, %v798_v1, %v1948_v20 }
  0xf2   : > { %v832_v44 = vsel %vm825_vm6, %v815_v21, %v1964_v37  ;;  %v782_v37 = vsel %vm774_vm3, %v1689_v45, %v1941_v14  ;;  %v783_v7 = vsel %vm774_vm3, %v1721_v57, %v1990_v55 }
  0xf3   : > { %697 = vrot.lane.b32.xlu1 %v513_v53, %s1531_s12  ;;  %645 = vrot.lane.b32.xlu0 %v253_v42, %s1530_s30  ;;  %v799_v54 = vsel %vm791_vm4, %v782_v37, %v1950_v22 }
  0xf4   : > { %v816_v56 = vsel %vm808_vm5, %v799_v54, %v1966_v38 }
  0xf5   : > { %v737_v34 = vpop.permute.xlu1 %736  ;;  %v582_v62 = vpop.permute.xlu0 %581  ;;  %v833_v32 = vsel %vm825_vm6, %v816_v56, %v1988_v48 }
  0xf6   : > { %v899_v40 = vsel %vm893_vm10, %v882_v46, %v737_v34  ;;  %v849_v3 = vsel %vm842_vm7, %v832_v44, %v582_v62 }
  0xf7   : > { %544 = vrot.lane.b32.xlu1 %v513_v53, %s1528_s28  ;;  %492 = vrot.lane.b32.xlu0 %v253_v42, %s1525_s25  ;;  %v721_v42 = vrot.slane %v255_v17, 2  ;;  %s2127_s25 = scalar_lea.vmem %s2235_s2, %s1370_s22 }
  0xf8   : > { %1409 = vmatmul.mubr.msk.f32.gmra.mxu0 %vm915_vm11, %v899_v40 }
  0xf9   : > { %v2006_v49 = vpop.permute.xlu1 %428  ;;  %v2008_v4 = vpop.permute.xlu0 %341  ;;  %v723_v51 = vsel %vm371_vm0, %v721_v42, %v722_v36 }
  0xfa   : > { %v784_v57 = vsel %vm774_vm3, %v1724_v58, %v2008_v4 }
  0xfb   : > { %750 = vrot.lane.b32.xlu1 %v566_v61, %s1532_s21  ;;  %699 = vrot.lane.b32.xlu0 %v515_v63, %s1531_s12 }
  0xfd   : > { %v632_v8 = vpop.permute.xlu1 %631  ;;  %v584_v9 = vpop.permute.xlu0 %583 }
  0xfe   : > { %v866_v10 = vsel %vm859_vm8, %v849_v3, %v632_v8  ;;  %v850_v59 = vsel %vm842_vm7, %v833_v32, %v584_v9  ;;  %v800_v8 = vsel %vm791_vm4, %v783_v7, %v2006_v49 }
  0xff   : > { %597 = vrot.lane.b32.xlu1 %v566_v61, %s1529_s29  ;;  %546 = vrot.lane.b32.xlu0 %v515_v63, %s1528_s28 }
 0x101   : > { %v479_v11 = vpop.permute.xlu1 %478  ;;  %v2015_v13 = vpop.permute.xlu0 %430 }
 0x102   : > { %v817_v9 = vsel %vm808_vm5, %v800_v8, %v479_v11  ;;  %v801_v55 = vsel %vm791_vm4, %v784_v57, %v2015_v13 }
 0x103   : > { %599 = vrot.lane.b32.xlu1 %v568_v5, %s1529_s29  ;;  %752 = vrot.lane.b32.xlu0 %v568_v5, %s1532_s21  ;;  %s225_s29 = scalar_lea.vmem %s2236_s3, %s1350_s26 }
 0x105   : > { %v686_v29 = vpop.permute.xlu1 %685  ;;  %v634_v30 = vpop.permute.xlu0 %633 }
 0x106   : > { %v883_v43 = vsel %vm876_vm9, %v866_v10, %v686_v29  ;;  %v867_v45 = vsel %vm859_vm8, %v850_v59, %v634_v30 }
 0x107   : > { %649 = vrot.lane.b32.xlu1 %v256_v16, %s1530_s30  ;;  %647 = vrot.lane.b32.xlu0 %v255_v17, %s1530_s30 }
 0x109   : > { %v533_v31 = vpop.permute.xlu1 %532  ;;  %v481_v33 = vpop.permute.xlu0 %480 }
 0x10a   : > { %v834_v17 = vsel %vm825_vm6, %v817_v9, %v533_v31  ;;  %v818_v49 = vsel %vm808_vm5, %v801_v55, %v481_v33 }
 0x10b   : > { %703 = vrot.lane.b32.xlu1 %v672_v25, %s1531_s12  ;;  %701 = vrot.lane.b32.xlu0 %v670_v6, %s1531_s12 }
 0x10d   : > { %v739_v20 = vpop.permute.xlu1 %738  ;;  %v688_v52 = vpop.permute.xlu0 %687 }
 0x10e   : > { %v900_v53 = vsel %vm893_vm10, %v883_v43, %v739_v20  ;;  %v884_v14 = vsel %vm876_vm9, %v867_v45, %v688_v52 }
 0x10f   : > { %756 = vrot.lane.b32.xlu1 %v725_v39, %s1532_s21  ;;  %754 = vrot.lane.b32.xlu0 %v723_v51, %s1532_s21 }
 0x110   : > { %1411 = vmatprep.mubr.msk.f32.mxu0 %vm915_vm11, %v900_v53 }
 0x111   : > { %v535_v27 = vpop.permute.xlu1 %534  ;;  %v344_v24 = vpop.permute.xlu0 %343 }
 0x112   : > { %v835_v36 = vsel %vm825_vm6, %v818_v49, %v535_v27  ;;  %v785_v39 = vsel %vm774_vm3, %v1758_v12, %v344_v24 }
 0x115   : > { %v741_v60 = vpop.permute.xlu1 %740  ;;  %v586_v0 = vpop.permute.xlu0 %585 }
 0x116   : > { %v901_v22 = vsel %vm893_vm10, %v884_v14, %v741_v60  ;;  %v851_v18 = vsel %vm842_vm7, %v834_v17, %v586_v0 }
 0x117   : > { %1412 = vmatmul.mubr.msk.f32.gmra.mxu0 %vm915_vm11, %v901_v22 }
 0x119   : > { %v433_v46 = vpop.permute.xlu1 %432  ;;  %v346_v34 = vpop.permute.xlu0 %345 }
 0x11a   : > { %v802_v51 = vsel %vm791_vm4, %v785_v39, %v433_v46  ;;  %v786_v12 = vsel %vm774_vm3, %v1761_v15, %v346_v34 }
 0x11d   : > { %v636_v38 = vpop.permute.xlu1 %635  ;;  %v588_v62 = vpop.permute.xlu0 %587 }
 0x11e   : > { %v868_v19 = vsel %vm859_vm8, %v851_v18, %v636_v38  ;;  %v852_v42 = vsel %vm842_vm7, %v835_v36, %v588_v62 }
 0x121   : > { %v483_v40 = vpop.permute.xlu1 %482  ;;  %v435_v61 = vpop.permute.xlu0 %434 }
 0x122   : > { %v819_v43 = vsel %vm808_vm5, %v802_v51, %v483_v40  ;;  %v803_v24 = vsel %vm791_vm4, %v786_v12, %v435_v61 }
 0x125   : > { %v690_v63 = vpop.permute.xlu1 %689  ;;  %v638_v48 = vpop.permute.xlu0 %637 }
 0x126   : > { %v885_v26 = vsel %vm876_vm9, %v868_v19, %v690_v63  ;;  %v869_v1 = vsel %vm859_vm8, %v852_v42, %v638_v48 }
 0x129   : > { %v537_v5 = vpop.permute.xlu1 %536  ;;  %v485_v16 = vpop.permute.xlu0 %484 }
 0x12a   : > { %v836_v53 = vsel %vm825_vm6, %v819_v43, %v537_v5  ;;  %v820_v45 = vsel %vm808_vm5, %v803_v24, %v485_v16 }
 0x12d   : > { %v743_v28 = vpop.permute.xlu1 %742  ;;  %v692_v29 = vpop.permute.xlu0 %691 }
 0x12e   : > { %v902_v30 = vsel %vm893_vm10, %v885_v26, %v743_v28  ;;  %v886_v25 = vsel %vm876_vm9, %v869_v1, %v692_v29 }
 0x12f   : > { %1414 = vmatprep.mubr.msk.f32.mxu1 %vm915_vm11, %v902_v30 }
 0x131   : > { %v539_v11 = vpop.permute.xlu1 %538  ;;  %v348_v35 = vpop.permute.xlu0 %347 }
 0x132   : > { %v837_v0 = vsel %vm825_vm6, %v820_v45, %v539_v11  ;;  %v787_v16 = vsel %vm774_vm3, %v1808_v47, %v348_v35 }
 0x135   : > { %v745_v6 = vpop.permute.xlu1 %744  ;;  %v590_v23 = vpop.permute.xlu0 %589 }
 0x136   : > { %v903_v58 = vsel %vm893_vm10, %v886_v25, %v745_v6  ;;  %v853_v37 = vsel %vm842_vm7, %v836_v53, %v590_v23 }
 0x137   : > { %1415 = vmatmul.mubr.msk.f32.vlgmr.msra.gmra.mxu1 %vm915_vm11, %v903_v58 }
 0x139   : > { %v437_v4 = vpop.permute.xlu1 %436  ;;  %v350_v13 = vpop.permute.xlu0 %349 }
 0x13a   : > { %v804_v17 = vsel %vm791_vm4, %v787_v16, %v437_v4  ;;  %v788_v47 = vsel %vm774_vm3, %v1816_v50, %v350_v13 }
 0x13d   : > { %v640_v21 = vpop.permute.xlu1 %639  ;;  %v592_v31 = vpop.permute.xlu0 %591 }
 0x13e   : > { %v870_v54 = vsel %vm859_vm8, %v853_v37, %v640_v21  ;;  %v854_v22 = vsel %vm842_vm7, %v837_v0, %v592_v31 }
 0x141   : > { %v487_v33 = vpop.permute.xlu1 %486  ;;  %v439_v44 = vpop.permute.xlu0 %438 }
 0x142   : > { %v821_v18 = vsel %vm808_vm5, %v804_v17, %v487_v33  ;;  %v805_v35 = vsel %vm791_vm4, %v788_v47, %v439_v44 }
 0x145   : > { %v694_v3 = vpop.permute.xlu1 %693  ;;  %v642_v10 = vpop.permute.xlu0 %641 }
 0x146   : > { %v887_v56 = vsel %vm876_vm9, %v870_v54, %v694_v3  ;;  %v871_v46 = vsel %vm859_vm8, %v854_v22, %v642_v10 }
 0x149   : > { %v541_v20 = vpop.permute.xlu1 %540  ;;  %v489_v52 = vpop.permute.xlu0 %488 }
 0x14a   : > { %v838_v28 = vsel %vm825_vm6, %v821_v18, %v541_v20  ;;  %v822_v36 = vsel %vm808_vm5, %v805_v35, %v489_v52 }
 0x14d   : > { %v747_v27 = vpop.permute.xlu1 %746  ;;  %v696_v32 = vpop.permute.xlu0 %695 }
 0x14e   : > { %v904_v59 = vsel %vm893_vm10, %v887_v56, %v747_v27  ;;  %v888_v38 = vsel %vm876_vm9, %v871_v46, %v696_v32 }
 0x14f   : > { %1417 = vmatprep.mubr.msk.f32.mxu1 %vm915_vm11, %v904_v59 }
 0x151   : > { %v543_v14 = vpop.permute.xlu1 %542  ;;  %v352_v60 = vpop.permute.xlu0 %351 }
 0x152   : > { %v839_v25 = vsel %vm825_vm6, %v822_v36, %v543_v14  ;;  %v789_v3 = vsel %vm774_vm3, %v1883_v41, %v352_v60 }
 0x155   : > { %v749_v62 = vpop.permute.xlu1 %748  ;;  %v594_v40 = vpop.permute.xlu0 %593 }
 0x156   : > { %v905_v15 = vsel %vm893_vm10, %v888_v38, %v749_v62  ;;  %v855_v29 = vsel %vm842_vm7, %v838_v28, %v594_v40 }
 0x157   : > { %1418 = vmatmul.mubr.msk.f32.gmra.mxu1 %vm915_vm11, %v905_v15 }
 0x159   : > { %v441_v34 = vpop.permute.xlu1 %440  ;;  %v354_v61 = vpop.permute.xlu0 %353 }
 0x15a   : > { %v790_v39 = vsel %vm774_vm3, %v1892_v2, %v354_v61  ;;  %v806_v52 = vsel %vm791_vm4, %v789_v3, %v441_v34 }
 0x15d   : > { %v644_v63 = vpop.permute.xlu1 %643  ;;  %v596_v48 = vpop.permute.xlu0 %595 }
 0x15e   : > { %v872_v30 = vsel %vm859_vm8, %v855_v29, %v644_v63  ;;  %v856_v6 = vsel %vm842_vm7, %v839_v25, %v596_v48 }
 0x161   : > { %v491_v7 = vpop.permute.xlu1 %490  ;;  %v443_v8 = vpop.permute.xlu0 %442 }
 0x162   : > { %v807_v53 = vsel %vm791_vm4, %v790_v39, %v443_v8  ;;  %v823_v54 = vsel %vm808_vm5, %v806_v52, %v491_v7 }
 0x165   : > { %v698_v9 = vpop.permute.xlu1 %697  ;;  %v646_v5 = vpop.permute.xlu0 %645 }
 0x166   : > { %v889_v57 = vsel %vm876_vm9, %v872_v30, %v698_v9  ;;  %v873_v23 = vsel %vm859_vm8, %v856_v6, %v646_v5 }
 0x169   : > { %v545_v19 = vpop.permute.xlu1 %544  ;;  %v493_v26 = vpop.permute.xlu0 %492 }
 0x16a   : > { %v824_v41 = vsel %vm808_vm5, %v807_v53, %v493_v26  ;;  %v840_v59 = vsel %vm825_vm6, %v823_v54, %v545_v19 }
 0x16d   : > { %v751_v55 = vpop.permute.xlu1 %750  ;;  %v700_v49 = vpop.permute.xlu0 %699 }
 0x16e   : > { %v906_v11 = vsel %vm893_vm10, %v889_v57, %v751_v55  ;;  %v890_v58 = vsel %vm876_vm9, %v873_v23, %v700_v49 }
 0x16f   : > { %1420 = vmatprep.mubr.msk.f32.mxu1 %vm915_vm11, %v906_v11 }
 0x171   : > { %v598_v42 = vpop.permute.xlu1 %597  ;;  %v547_v1 = vpop.permute.xlu0 %546 }
 0x172   : > { %v841_v12 = vsel %vm825_vm6, %v824_v41, %v547_v1  ;;  %v857_v45 = vsel %vm842_vm7, %v840_v59, %v598_v42 }
 0x175   : > { %v600_v4 = vpop.permute.xlu1 %599  ;;  %v753_v21 = vpop.permute.xlu0 %752 }
 0x176   : > { %v907_v50 = vsel %vm893_vm10, %v890_v58, %v753_v21  ;;  %v858_v14 = vsel %vm842_vm7, %v841_v12, %v600_v4 }
 0x177   : > { %1421 = vmatmul.mubr.msk.f32.gmra.mxu1 %vm915_vm11, %v907_v50 }
 0x178   : > { %v1404_v13 = vpop.f32.mrf.mxu0 }
 0x179   : > { %1114 = vst.msk [vmem:[%s2127_s25 + $0x8] sm:$0xff] %vm893_vm10, %v1404_v13  ;;  %v1167_v31 = vmul.f32 %v1404_v13, %v1404_v13  ;;  %v650_v33 = vpop.permute.xlu1 %649  ;;  %v648_v44 = vpop.permute.xlu0 %647  ;;  %v1130_v51 = vsel %vm893_vm10, %v1404_v13, 0.0 }
 0x17a   : > { %v1034_v10 = vpop.f32.mrf.mxu0  ;;  %v875_v60 = vsel %vm859_vm8, %v858_v14, %v650_v33  ;;  %v874_v0 = vsel %vm859_vm8, %v857_v45, %v648_v44 }
 0x17b   : > { %1113 = vst.msk [vmem:[%s2127_s25] sm:$0xff] %vm893_vm10, %v1034_v10  ;;  %v1129_v43 = vsel %vm893_vm10, %v1034_v10, 0.0  ;;  %v1166_v20 = vmul.f32 %v1034_v10, %v1034_v10  ;;  %v1183_v56 = vsel %vm893_vm10, %v1167_v31, 0.0 }
 0x17c   : > { %v1131_v37 = vadd.f32 %v1130_v51, %v1129_v43 }
 0x17d   : > { %v1182_v2 = vsel %vm893_vm10, %v1166_v20, 0.0  ;;  %v704_v27 = vpop.permute.xlu1 %703  ;;  %v702_v32 = vpop.permute.xlu0 %701 }
 0x17e   : > { %v1184_v24 = vadd.f32 %v1183_v56, %v1182_v2  ;;  %v892_v22 = vsel %vm876_vm9, %v875_v60, %v704_v27  ;;  %v891_v46 = vsel %vm876_vm9, %v874_v0, %v702_v32 }
 0x181   : > { %v757_v38 = vpop.permute.xlu1 %756  ;;  %v755_v62 = vpop.permute.xlu0 %754 }
 0x182   : > { %v909_v40 = vsel %vm893_vm10, %v892_v22, %v757_v38  ;;  %v908_v15 = vsel %vm893_vm10, %v891_v46, %v755_v62 }
 0x183   : > { %1423 = vmatprep.mubr.msk.f32.mxu1 %vm915_vm11, %v908_v15 }
 0x184   : > { %1424 = vmatmul.mubr.msk.f32.gmra.mxu1 %vm915_vm11, %v909_v40 }
 0x198   : > { %v1407_v34 = vpop.f32.mrf.mxu0 }
 0x199   : > { %1116 = vst.msk [vmem:[%s2127_s25 + $0x18] sm:$0xff] %vm893_vm10, %v1407_v34  ;;  %v1169_v63 = vmul.f32 %v1407_v34, %v1407_v34  ;;  %v1134_v9 = vsel %vm893_vm10, %v1407_v34, 0.0 }
 0x19a   : > { %v1044_v61 = vpop.f32.mrf.mxu0 }
 0x19b   : > { %1115 = vst.msk [vmem:[%s2127_s25 + $0x10] sm:$0xff] %vm893_vm10, %v1044_v61  ;;  %v1132_v48 = vsel %vm893_vm10, %v1044_v61, 0.0  ;;  %v1168_v7 = vmul.f32 %v1044_v61, %v1044_v61  ;;  %v1187_v18 = vsel %vm893_vm10, %v1169_v63, 0.0 }
 0x19c   : > { %v1133_v8 = vadd.f32 %v1132_v48, %v1131_v37 }
 0x19d   : > { %v1185_v5 = vsel %vm893_vm10, %v1168_v7, 0.0 }
 0x19e   : > { %v1186_v16 = vadd.f32 %v1185_v5, %v1184_v24  ;;  %v1135_v17 = vadd.f32 %v1134_v9, %v1133_v8 }
 0x1a0   : > { %v1188_v19 = vadd.f32 %v1187_v18, %v1186_v16 }
 0x1b8   : > { %v1410_v26 = vpop.f32.mrf.mxu0 }
 0x1b9   : > { %1118 = vst.msk [vmem:[%s2127_s25 + $0x28] sm:$0xff] %vm893_vm10, %v1410_v26  ;;  %v1171_v29 = vmul.f32 %v1410_v26, %v1410_v26  ;;  %v1138_v49 = vsel %vm893_vm10, %v1410_v26, 0.0 }
 0x1ba   : > { %v1054_v28 = vpop.f32.mrf.mxu0 }
 0x1bb   : > { %1117 = vst.msk [vmem:[%s2127_s25 + $0x20] sm:$0xff] %vm893_vm10, %v1054_v28  ;;  %v1136_v30 = vsel %vm893_vm10, %v1054_v28, 0.0  ;;  %v1170_v57 = vmul.f32 %v1054_v28, %v1054_v28  ;;  %v1191_v36 = vsel %vm893_vm10, %v1171_v29, 0.0 }
 0x1bc   : > { %v1137_v55 = vadd.f32 %v1136_v30, %v1135_v17 }
 0x1bd   : > { %v1189_v11 = vsel %vm893_vm10, %v1170_v57, 0.0 }
 0x1be   : > { %v1190_v47 = vadd.f32 %v1189_v11, %v1188_v19  ;;  %v1139_v35 = vadd.f32 %v1138_v49, %v1137_v55 }
 0x1c0   : > { %v1192_v42 = vadd.f32 %v1191_v36, %v1190_v47 }
 0x1d7   : > { %v1413_v1 = vpop.f32.mrf.mxu0 }
 0x1d8   : > { %1120 = vst.msk [vmem:[%s2127_s25 + $0x38] sm:$0xff] %vm893_vm10, %v1413_v1  ;;  %v1173_v6 = vmul.f32 %v1413_v1, %v1413_v1  ;;  %v1142_v21 = vsel %vm893_vm10, %v1413_v1, 0.0 }
 0x1d9   : > { %v1064_v25 = vpop.f32.mrf.mxu0 }
 0x1da   : > { %1119 = vst.msk [vmem:[%s2127_s25 + $0x30] sm:$0xff] %vm893_vm10, %v1064_v25  ;;  %v1140_v23 = vsel %vm893_vm10, %v1064_v25, 0.0  ;;  %v1172_v58 = vmul.f32 %v1064_v25, %v1064_v25  ;;  %v1195_v33 = vsel %vm893_vm10, %v1173_v6, 0.0 }
 0x1db   : > { %v1141_v4 = vadd.f32 %v1140_v23, %v1139_v35 }
 0x1dc   : > { %v1193_v50 = vsel %vm893_vm10, %v1172_v58, 0.0 }
 0x1dd   : > { %v1143_v13 = vadd.f32 %v1142_v21, %v1141_v4  ;;  %v1194_v31 = vadd.f32 %v1193_v50, %v1192_v42 }
 0x1df   : > { %v1196_v44 = vadd.f32 %v1195_v33, %v1194_v31 }
 0x1f7   : > { %v1416_v3 = vpop.f32.mrf.mxu1 }
 0x1f8   : > { %1122 = vst.msk [vmem:[%s2127_s25 + $0x48] sm:$0xff] %vm893_vm10, %v1416_v3  ;;  %v1175_v39 = vmul.f32 %v1416_v3, %v1416_v3  ;;  %v1146_v52 = vsel %vm893_vm10, %v1416_v3, 0.0 }
 0x1f9   : > { %v1074_v10 = vpop.f32.mrf.mxu1 }
 0x1fa   : > { %1121 = vst.msk [vmem:[%s2127_s25 + $0x40] sm:$0xff] %vm893_vm10, %v1074_v10  ;;  %v1144_v51 = vsel %vm893_vm10, %v1074_v10, 0.0  ;;  %v1174_v43 = vmul.f32 %v1074_v10, %v1074_v10  ;;  %v1199_v41 = vsel %vm893_vm10, %v1175_v39, 0.0 }
 0x1fb   : > { %v1145_v20 = vadd.f32 %v1144_v51, %v1143_v13 }
 0x1fc   : > { %v1197_v53 = vsel %vm893_vm10, %v1174_v43, 0.0 }
 0x1fd   : > { %v1198_v37 = vadd.f32 %v1197_v53, %v1196_v44  ;;  %v1147_v54 = vadd.f32 %v1146_v52, %v1145_v20 }
 0x1ff   : > { %v1200_v56 = vadd.f32 %v1199_v41, %v1198_v37 }
 0x217   : > { %v1419_v2 = vpop.f32.mrf.mxu1 }
 0x218   : > { %1124 = vst.msk [vmem:[%s2127_s25 + $0x58] sm:$0xff] %vm893_vm10, %v1419_v2  ;;  %v1177_v60 = vmul.f32 %v1419_v2, %v1419_v2  ;;  %v1150_v46 = vsel %vm893_vm10, %v1419_v2, 0.0 }
 0x219   : > { %v1084_v27 = vpop.f32.mrf.mxu1 }
 0x21a   : > { %1123 = vst.msk [vmem:[%s2127_s25 + $0x50] sm:$0xff] %vm893_vm10, %v1084_v27  ;;  %v1176_v32 = vmul.f32 %v1084_v27, %v1084_v27  ;;  %v1148_v12 = vsel %vm893_vm10, %v1084_v27, 0.0  ;;  %v1203_v40 = vsel %vm893_vm10, %v1177_v60, 0.0 }
 0x21b   : > { %v1149_v14 = vadd.f32 %v1148_v12, %v1147_v54 }
 0x21c   : > { %v1201_v45 = vsel %vm893_vm10, %v1176_v32, 0.0 }
 0x21d   : > { %v1202_v22 = vadd.f32 %v1201_v45, %v1200_v56  ;;  %v1151_v62 = vadd.f32 %v1150_v46, %v1149_v14 }
 0x21f   : > { %v1204_v61 = vadd.f32 %v1203_v40, %v1202_v22 }
 0x237   : > { %v1422_v59 = vpop.f32.mrf.mxu1 }
 0x238   : > { %1126 = vst.msk [vmem:[%s2127_s25 + $0x68] sm:$0xff] %vm893_vm10, %v1422_v59  ;;  %v1179_v63 = vmul.f32 %v1422_v59, %v1422_v59  ;;  %v1154_v8 = vsel %vm893_vm10, %v1422_v59, 0.0 }
 0x239   : > { %v1094_v24 = vpop.f32.mrf.mxu1 }
 0x23a   : > { %1125 = vst.msk [vmem:[%s2127_s25 + $0x60] sm:$0xff] %vm893_vm10, %v1094_v24  ;;  %v1178_v0 = vmul.f32 %v1094_v24, %v1094_v24  ;;  %v1152_v38 = vsel %vm893_vm10, %v1094_v24, 0.0  ;;  %v1207_v16 = vsel %vm893_vm10, %v1179_v63, 0.0 }
 0x23b   : > { %v1153_v34 = vadd.f32 %v1152_v38, %v1151_v62 }
 0x23c   : > { %v1205_v15 = vsel %vm893_vm10, %v1178_v0, 0.0 }
 0x23d   : > { %v1206_v48 = vadd.f32 %v1205_v15, %v1204_v61  ;;  %v1155_v5 = vadd.f32 %v1154_v8, %v1153_v34 }
 0x23f   : > { %v1208_v28 = vadd.f32 %v1207_v16, %v1206_v48 }
 0x244   : > { %v1425_v7 = vpop.f32.mrf.mxu1 }
 0x245   : > { %1128 = vst.msk [vmem:[%s2127_s25 + $0x78] sm:$0xff] %vm893_vm10, %v1425_v7  ;;  %v1181_v17 = vmul.f32 %v1425_v7, %v1425_v7  ;;  %v1158_v29 = vsel %vm893_vm10, %v1425_v7, 0.0 }
 0x246   : > { %v1104_v9 = vpop.f32.mrf.mxu1 }
 0x247   : > { %1127 = vst.msk [vmem:[%s2127_s25 + $0x70] sm:$0xff] %vm893_vm10, %v1104_v9  ;;  %v1156_v18 = vsel %vm893_vm10, %v1104_v9, 0.0  ;;  %v1180_v19 = vmul.f32 %v1104_v9, %v1104_v9  ;;  %v1211_v49 = vsel %vm893_vm10, %v1181_v17, 0.0 }
 0x248   : > { %v1157_v26 = vadd.f32 %v1156_v18, %v1155_v5 }
 0x249   : > { %v1209_v30 = vsel %vm893_vm10, %v1180_v19, 0.0 }
 0x24a   : > { %v1159_v57 = vadd.f32 %v1158_v29, %v1157_v26  ;;  %v1210_v55 = vadd.f32 %v1209_v30, %v1208_v28 }
 0x24c   : > { %v1160_v11 = vrot.slane %v1159_v57, 4  ;;  %v1212_v47 = vadd.f32 %v1211_v49, %v1210_v55 }
 0x24e   : > { %v1161_v35 = vadd.f32 %v1160_v11, %v1159_v57  ;;  %v1213_v36 = vrot.slane %v1212_v47, 4 }
 0x250   : > { %v1162_v42 = vrot.slane %v1161_v35, 2  ;;  %v1214_v1 = vadd.f32 %v1213_v36, %v1212_v47 }
 0x252   : > { %v1163_v25 = vadd.f32 %v1162_v42, %v1161_v35  ;;  %v1215_v6 = vrot.slane %v1214_v1, 2 }
 0x254   : > { %v1164_v23 = vrot.slane %v1163_v25, 1  ;;  %v1216_v58 = vadd.f32 %v1215_v6, %v1214_v1 }
 0x256   : > { %v1217_v4 = vrot.slane %v1216_v58, 1  ;;  %v1165_v21 = vadd.f32 %v1164_v23, %v1163_v25 }
 0x258   : > { %v1218_v50 = vadd.f32 %v1217_v4, %v1216_v58 }
 0x25a   : > { %v1220_v13 = vsel %vm1219_vm12, %v1165_v21, %v1218_v50 }
 0x25b   : > { %1222 = vst.msk [vmem:[%s225_s29] sm:$0x3] %vm1221_vm13, %v1220_v13 }
 0x25c PF: > { %s14_s16 = sadd.s32 1, %s1523_s16   ;;  %s2237_s12 = smov %s1515_s14 }
 0x25d   : > { %p11_p6 = scmp.ge.s32.totalorder %s14_s16, 6   ;;  %s2238_s13 = smov %s1519_s15 }
 0x25e   : > { %s2239_s14 = smov %s2242_s17  ;;  %s2240_s15 = smov %s2246_s18 }
 0x25f   :  { %13 = sbr.rel (!%p11_p6) target bundleno = 3 (0x3), region = 70 }

</bundles_post_ra>
